<compile_context>
chip_gen: v6e
topology: v6e:2x2x1
jax: 0.10.0
libtpu: 0.0.40
codegen_flags: <defaults>
</compile_context>

<pallas_src>
import functools

import jax
import jax.numpy as jnp
from jax.experimental import pallas as pl
from jax.experimental.pallas import tpu as pltpu

LANE = 128
BF16_SUBLANE = 16  # sublane packing of bf16: row offsets in the packed slab


def _round_up(n, m):
    return ((n + m - 1) // m) * m


def _ffn_kernel(x_ref, w_ref, b_ref, o_ref, *, in_dim, hid_pad, out_pad, r2, r3):
    """Fused 3-layer MLP: bf16 MXU matmuls with f32 accumulation, f32 bias+ReLU.

    w_ref is the packed weight slab  [r3 + hid_pad, width] (bf16):
        rows [0, in_dim)        -> W1  (cols [0, hid_pad))
        rows [r2, r2 + hid_pad) -> W2  (cols [0, hid_pad))
        rows [r3, r3 + hid_pad) -> W3  (cols [0, out_pad))
    b_ref is the packed bias slab [3, width] (f32): rows = b1, b2, b3.
    All static slices below are zero-cost ref views.
    """
    x = x_ref[...].astype(jnp.bfloat16)                  # f32 -> bf16 on the VPU (in-kernel)

    h = jnp.dot(x, w_ref[0:in_dim, 0:hid_pad],
                preferred_element_type=jnp.float32)      # [blk, hid_pad] f32
    h = jnp.maximum(h + b_ref[0:1, 0:hid_pad], 0.0).astype(jnp.bfloat16)

    h = jnp.dot(h, w_ref[r2:r2 + hid_pad, 0:hid_pad],
                preferred_element_type=jnp.float32)
    h = jnp.maximum(h + b_ref[1:2, 0:hid_pad], 0.0).astype(jnp.bfloat16)

    y = jnp.dot(h, w_ref[r3:r3 + hid_pad, 0:out_pad],
                preferred_element_type=jnp.float32) + b_ref[2:3, 0:out_pad]

    o_ref[...] = y.astype(o_ref.dtype)                   # lane-dense 128-wide store


def _default_block_b(B):
    """Per-generation batch tile.

    v5e / v6e: one TensorCore -> one grid step (per-step overhead ~0.35us is
    larger than the overlap two steps would buy; the whole working set is
    <1 MiB so it trivially fits VMEM).
    v7x: two TensorCores -> keep a multiple-of-2 "parallel" grid so both cores
    get work; keep M >= 256 per tile where possible (review: don't shrink M
    below 256 on the 2x256 MXU generations), go to >=2 steps/core only when B
    is large enough to hide the x-tile DMA behind the matmul chain.
    """
    try:
        kind = jax.devices()[0].device_kind.lower()
    except Exception:  # pragma: no cover - defensive; assume single-TC layout
        kind = ""
    if "v7" in kind:
        tiles = 2 if B <= 1024 else 4
        return max(8, min(B, _round_up(pl.cdiv(B, tiles), 8)))
    return B


@functools.partial(
    jax.jit,
    static_argnames=("hidden_dim", "output_dim", "block_b", "out_dtype", "return_padded"),
)
def _ffn_forward(x, w_packed, b_packed, *, hidden_dim, output_dim, block_b,
                 out_dtype, return_padded):
    B, input_dim = x.shape
    hid_pad = _round_up(hidden_dim, LANE)
    out_pad = _round_up(output_dim, LANE)
    r2 = _round_up(input_dim, BF16_SUBLANE)
    r3 = r2 + hid_pad
    total_rows, width = w_packed.shape

    # NOTE: if B is not a multiple of block_b the last output tile relies on
    # Pallas OOB masking (correct; re-verified for the block_b choices above).
    grid = (pl.cdiv(B, block_b),)

    flops = 2 * B * (input_dim * hid_pad + hid_pad * hid_pad + hid_pad * out_pad)
    bytes_accessed = (
        B * input_dim * 4                      # x (f32, un-padded)
        + w_packed.size * 2                    # packed bf16 weights
        + b_packed.size * 4                    # packed f32 biases
        + B * out_pad * jnp.dtype(out_dtype).itemsize
    )

    kernel = functools.partial(
        _ffn_kernel, in_dim=input_dim, hid_pad=hid_pad, out_pad=out_pad, r2=r2, r3=r3)

    out_padded = pl.pallas_call(
        kernel,
        out_shape=jax.ShapeDtypeStruct((B, out_pad), out_dtype),
        grid_spec=pltpu.PrefetchScalarGridSpec(
            num_scalar_prefetch=0,
            grid=grid,
            in_specs=[
                # x tile: full-extent (un-padded) last dim, cast to bf16 in-kernel.
                pl.BlockSpec((block_b, input_dim), lambda i: (i, 0)),
                # Grid-invariant packed weight / bias slabs (2 DMA streams, not 6).
                pl.BlockSpec((total_rows, width), lambda i: (0, 0)),
                pl.BlockSpec((3, width), lambda i: (0, 0)),
            ],
            out_specs=pl.BlockSpec((block_b, out_pad), lambda i: (i, 0)),
        ),
        compiler_params=pltpu.CompilerParams(
            dimension_semantics=("parallel",),   # batch tiles -> both TCs on v7x
            vmem_limit_bytes=8 * 1024 * 1024,    # actual need <1 MiB; keep headroom
        ),
        cost_estimate=pl.CostEstimate(
            flops=flops, transcendentals=0, bytes_accessed=bytes_accessed),
    )(x, w_packed, b_packed)

    if return_padded:
        # Perf path: hand the lane-dense 128-wide slab (padded logit columns are
        # exact zeros) straight to the consumer; no extra slice HLO.
        return out_padded
    return out_padded[:, :output_dim]


def deeper_ffn_classifier(x, w_packed, b_packed, *, hidden_dim, output_dim,
                          block_b=None, out_dtype=jnp.float32, return_padded=False):
    """x: [B, input_dim] f32. Returns f32 logits [B, output_dim] by default
    (matching the PyTorch module); return_padded=True returns the padded
    [B, round_up(output_dim, 128)] slab, out_dtype=bf16 halves the output stream."""
    if block_b is None:
        block_b = _default_block_b(x.shape[0])
    return _ffn_forward(x, w_packed, b_packed, hidden_dim=hidden_dim,
                        output_dim=output_dim, block_b=block_b,
                        out_dtype=out_dtype, return_padded=return_padded)


def init_params(key, input_dim, hidden_dim, output_dim):
    """Deterministic init matching nn.Linear shapes (weights kept transposed [in, out])."""
    ks = jax.random.split(key, 6)

    def linear(kw, kb, fan_in, fan_out):
        bound = 1.0 / jnp.sqrt(fan_in)
        w = jax.random.uniform(kw, (fan_in, fan_out), jnp.float32, -bound, bound)
        b = jax.random.uniform(kb, (fan_out,), jnp.float32, -bound, bound)
        return w, b

    w1, b1 = linear(ks[0], ks[1], input_dim, hidden_dim)
    w2, b2 = linear(ks[2], ks[3], hidden_dim, hidden_dim)
    w3, b3 = linear(ks[4], ks[5], hidden_dim, output_dim)
    return w1, b1, w2, b2, w3, b3


def prepare_params(w1, b1, w2, b2, w3, b3):
    """One-time packing: all three weight matrices into one lane-aligned bf16 slab
    and all three biases into one f32 slab.

    Zero padding preserves semantics: padded hidden units get 0 weight + 0 bias
    -> ReLU -> 0 -> multiply zero rows downstream; padded output columns are
    exact zeros (sliced off / ignored by the consumer).
    W1's row block is NOT padded to 128 (only to the bf16 sublane multiple for
    an aligned W2 offset), so layer-1 K stays at input_dim.
    """
    in_dim, hid = w1.shape
    out_dim = w3.shape[1]
    hid_pad = _round_up(hid, LANE)
    out_pad = _round_up(out_dim, LANE)
    width = max(hid_pad, out_pad)
    r2 = _round_up(in_dim, BF16_SUBLANE)
    r3 = r2 + hid_pad

    w_packed = jnp.zeros((r3 + hid_pad, width), jnp.float32)
    w_packed = w_packed.at[0:in_dim, 0:hid].set(w1)
    w_packed = w_packed.at[r2:r2 + hid, 0:hid].set(w2)
    w_packed = w_packed.at[r3:r3 + hid, 0:out_dim].set(w3)
    w_packed = w_packed.astype(jnp.bfloat16)

    b_packed = jnp.zeros((3, width), jnp.float32)
    b_packed = b_packed.at[0, 0:hid].set(b1)
    b_packed = b_packed.at[1, 0:hid].set(b2)
    b_packed = b_packed.at[2, 0:out_dim].set(b3)
    return w_packed, b_packed


def reference_bf16(x, w1, b1, w2, b2, w3, b3):
    """Reference with the SAME quantization the kernel applies: every matmul
    consumes bf16 operands (input, weights, and intermediate activations) and
    accumulates in f32; bias add + ReLU in f32."""
    q = lambda a: a.astype(jnp.bfloat16)
    f32 = jnp.float32
    h1 = jnp.maximum(jnp.dot(q(x), q(w1), preferred_element_type=f32) + b1, 0.0)
    h2 = jnp.maximum(jnp.dot(q(h1), q(w2), preferred_element_type=f32) + b2, 0.0)
    return jnp.dot(q(h2), q(w3), preferred_element_type=f32) + b3


if __name__ == "__main__":
    key = jax.random.PRNGKey(0)
    B, input_dim, hidden_dim, output_dim = 512, 32, 60, 10

    kx, kp = jax.random.split(key)
    x = jax.random.normal(kx, (B, input_dim), jnp.float32)
    params = init_params(kp, input_dim, hidden_dim, output_dim)
    w_packed, b_packed = prepare_params(*params)

    # Perf-preferred path: get the lane-dense padded slab back (no slice HLO);
    # the "module" output is its first `output_dim` columns.
    out_slab = deeper_ffn_classifier(
        x, w_packed, b_packed,
        hidden_dim=hidden_dim, output_dim=output_dim,
        return_padded=True)
    out_slab = jax.block_until_ready(out_slab)

    out_pad = _round_up(output_dim, LANE)
    assert out_slab.shape == (B, out_pad)
    # Padded logit columns must be exact zeros (zero weight cols + zero bias).
    assert bool(jnp.all(out_slab[:, output_dim:] == 0.0))

    logits = out_slab[:, :output_dim]
    assert logits.shape == (B, output_dim)

    w1, b1, w2, b2, w3, b3 = params
    ref = reference_bf16(x, w1, b1, w2, b2, w3, b3)
    assert jnp.allclose(logits, ref, atol=5e-3, rtol=5e-3), "mismatch vs reference"

    print("KERNEL_OK")
</pallas_src>

<mosaic_0001>
module attributes {stable_mosaic.version = 11 : i64} {
  func.func @_ffn_kernel(%arg0: i32, %arg1: memref<512x32xf32, #tpu.memory_space<vmem>>, %arg2: memref<288x128xbf16, #tpu.memory_space<vmem>>, %arg3: memref<3x128xf32, #tpu.memory_space<vmem>>, %arg4: memref<512x128xf32, #tpu.memory_space<vmem>>) attributes {dimension_semantics = [#tpu.dimension_semantics<parallel>], iteration_bounds = array<i64: 1>, scalar_prefetch = 0 : i64, scratch_operands = 0 : i64, tpu.core_type = #tpu.core_type<tc>, window_params = [{transform_indices = @transform_0, window_bounds = array<i64: 512, 32>}, {pipeline_mode = #tpu.pipeline_mode<synchronous>, transform_indices = @transform_1, window_bounds = array<i64: 288, 128>}, {pipeline_mode = #tpu.pipeline_mode<synchronous>, transform_indices = @transform_2, window_bounds = array<i64: 3, 128>}, {transform_indices = @transform_3, window_bounds = array<i64: 512, 128>}]} {
    %c0 = arith.constant 0 : index
    %c0_0 = arith.constant 0 : index
    %0 = vector.load %arg1[%c0, %c0_0] : memref<512x32xf32, #tpu.memory_space<vmem>>, vector<512x32xf32>
    %1 = arith.truncf %0 : vector<512x32xf32> to vector<512x32xbf16>
    %c0_1 = arith.constant 0 : index
    %c0_2 = arith.constant 0 : index
    %2 = vector.load %arg2[%c0_1, %c0_2] : memref<288x128xbf16, #tpu.memory_space<vmem>>, vector<32x128xbf16>
    %cst = arith.constant dense<0.000000e+00> : vector<512x128xf32>
    %3 = tpu.matmul %1, %2, %cst {dimension_numbers = #tpu.dot_dimension_numbers<[1], [0], [0], [1], [0, 0, 1, 1], [], []>} : vector<512x32xbf16>, vector<32x128xbf16>, vector<512x128xf32> -> vector<512x128xf32>
    %c0_3 = arith.constant 0 : index
    %c0_4 = arith.constant 0 : index
    %4 = vector.load %arg3[%c0_3, %c0_4] : memref<3x128xf32, #tpu.memory_space<vmem>>, vector<1x128xf32>
    %5 = vector.broadcast %4 : vector<1x128xf32> to vector<512x128xf32>
    %6 = arith.addf %3, %5 : vector<512x128xf32>
    %cst_5 = arith.constant 0.000000e+00 : f32
    %7 = vector.broadcast %cst_5 : f32 to vector<512x128xf32>
    %8 = arith.maximumf %6, %7 : vector<512x128xf32>
    %9 = arith.truncf %8 : vector<512x128xf32> to vector<512x128xbf16>
    %c32 = arith.constant 32 : index
    %c0_6 = arith.constant 0 : index
    %10 = vector.load %arg2[%c32, %c0_6] : memref<288x128xbf16, #tpu.memory_space<vmem>>, vector<128x128xbf16>
    %cst_7 = arith.constant dense<0.000000e+00> : vector<512x128xf32>
    %11 = tpu.matmul %9, %10, %cst_7 {dimension_numbers = #tpu.dot_dimension_numbers<[1], [0], [0], [1], [0, 0, 1, 1], [], []>} : vector<512x128xbf16>, vector<128x128xbf16>, vector<512x128xf32> -> vector<512x128xf32>
    %c1 = arith.constant 1 : index
    %c0_8 = arith.constant 0 : index
    %12 = vector.load %arg3[%c1, %c0_8] : memref<3x128xf32, #tpu.memory_space<vmem>>, vector<1x128xf32>
    %13 = vector.broadcast %12 : vector<1x128xf32> to vector<512x128xf32>
    %14 = arith.addf %11, %13 : vector<512x128xf32>
    %cst_9 = arith.constant 0.000000e+00 : f32
    %15 = vector.broadcast %cst_9 : f32 to vector<512x128xf32>
    %16 = arith.maximumf %14, %15 : vector<512x128xf32>
    %17 = arith.truncf %16 : vector<512x128xf32> to vector<512x128xbf16>
    %c160 = arith.constant 160 : index
    %c0_10 = arith.constant 0 : index
    %18 = vector.load %arg2[%c160, %c0_10] : memref<288x128xbf16, #tpu.memory_space<vmem>>, vector<128x128xbf16>
    %cst_11 = arith.constant dense<0.000000e+00> : vector<512x128xf32>
    %19 = tpu.matmul %17, %18, %cst_11 {dimension_numbers = #tpu.dot_dimension_numbers<[1], [0], [0], [1], [0, 0, 1, 1], [], []>} : vector<512x128xbf16>, vector<128x128xbf16>, vector<512x128xf32> -> vector<512x128xf32>
    %c2 = arith.constant 2 : index
    %c0_12 = arith.constant 0 : index
    %20 = vector.load %arg3[%c2, %c0_12] : memref<3x128xf32, #tpu.memory_space<vmem>>, vector<1x128xf32>
    %21 = vector.broadcast %20 : vector<1x128xf32> to vector<512x128xf32>
    %22 = arith.addf %19, %21 : vector<512x128xf32>
    %c0_13 = arith.constant 0 : index
    %c0_14 = arith.constant 0 : index
    %23 = vector.load %arg4[%c0_13, %c0_14] : memref<512x128xf32, #tpu.memory_space<vmem>>, vector<512x128xf32>
    tpu.vector_store %arg4[%c0_13, %c0_14], %22 {strides = array<i32>} : memref<512x128xf32, #tpu.memory_space<vmem>>, vector<512x128xf32>,
    return
  }
  func.func @transform_0(%arg0: i32) -> (i32, i32) {
    %c0_i32 = arith.constant 0 : i32
    %c0_i32_0 = arith.constant 0 : i32
    return %arg0, %c0_i32 : i32, i32
  }
  func.func @transform_1(%arg0: i32) -> (i32, i32) {
    %c0_i32 = arith.constant 0 : i32
    %c0_i32_0 = arith.constant 0 : i32
    %c0_i32_1 = arith.constant 0 : i32
    return %c0_i32, %c0_i32_0 : i32, i32
  }
  func.func @transform_2(%arg0: i32) -> (i32, i32) {
    %c0_i32 = arith.constant 0 : i32
    %c0_i32_0 = arith.constant 0 : i32
    %c0_i32_1 = arith.constant 0 : i32
    return %c0_i32, %c0_i32_0 : i32, i32
  }
  func.func @transform_3(%arg0: i32) -> (i32, i32) {
    %c0_i32 = arith.constant 0 : i32
    %c0_i32_0 = arith.constant 0 : i32
    return %arg0, %c0_i32 : i32, i32
  }
}

</mosaic_0001>

<bundles_post_ra>
// kernel: _ffn_forward.1
= control target key start
LH: loop header
LB: loop body
LE: loop exit
PB: predicated region body
PF: predicated region fallthrough
CT: control target
= control target key end

     0   :  { %vm133_vm0 = vcmask 261120   ;;  %s2520_s0 = inlined_call_operand.vmem [shape: f32[512,32], index: 0, kind: input, shape index: {}]   ;;  %s2521_s1 = inlined_call_operand.vmem [shape: bf16[288,128], index: 1, kind: input, shape index: {}]   ;;  %s2522_s2 = inlined_call_operand.vmem [shape: f32[3,128], index: 2, kind: input, shape index: {}]   ;;  %s2523_s3 = inlined_call_operand.hbm [shape: f32[512,128], index: 3, kind: output, shape index: {}]  }
   0x1   :  { %v1909_v0 = vld [vmem:[%s2521_s1 + $0x8] sm:$0xff]   ;;  %v1910_v1 = vld [vmem:[%s2521_s1] sm:$0xff]   ;;  %v18_v5 = vld [vmem:[%s2520_s0 + $0x10] sm:$0xff] }
   0x2   :  { %1674 = vmatprep.subr.bf16.mxu0 %v1909_v0  ;;  %v16_v2 = vld [vmem:[%s2520_s0] sm:$0xff]  ;;  %v17_v3 = vld [vmem:[%s2520_s0 + $0x8] sm:$0xff]  ;;  %1902 = vmatprep.subr.bf16.mxu1 %v1909_v0  ;;  %v19_v6 = vld [vmem:[%s2520_s0 + $0x18] sm:$0xff] }
   0x3   :  { %1675 = vmatpush3.bf16.msra.mxu0 %v1909_v0  ;;  %v80_v4 = vpack.c.bf16 %v17_v3, %v16_v2  ;;  %1904 = vmatpush3.bf16.msra.mxu1 %v1909_v0  ;;  %v20_v7 = vld [vmem:[%s2520_s0 + $0x20] sm:$0xff]  ;;  %v21_v8 = vld [vmem:[%s2520_s0 + $0x28] sm:$0xff]  ;;  %v81_v9 = vpack.c.bf16 %v19_v6, %v18_v5  ;;  %v22_v11 = vld [vmem:[%s2520_s0 + $0x30] sm:$0xff] }
   0x4   :  { %1676 = vmatprep.subr.bf16.mxu0 %v1910_v1  ;;  %1903 = vmatprep.subr.bf16.mxu1 %v1910_v1  ;;  %v82_v10 = vpack.c.bf16 %v21_v8, %v20_v7  ;;  %v23_v12 = vld [vmem:[%s2520_s0 + $0x38] sm:$0xff]  ;;  %v24_v13 = vld [vmem:[%s2520_s0 + $0x40] sm:$0xff]  ;;  %v25_v14 = vld [vmem:[%s2520_s0 + $0x48] sm:$0xff] }
   0x5   :  { %1678 = vmatprep.mubr.msk.bf16.mxu0 %vm133_vm0, %v80_v4  ;;  %v48_v15 = vld [vmem:[%s2520_s0 + $0x100] sm:$0xff]  ;;  %v49_v16 = vld [vmem:[%s2520_s0 + $0x108] sm:$0xff]  ;;  %v50_v17 = vld [vmem:[%s2520_s0 + $0x110] sm:$0xff]  ;;  %v83_v19 = vpack.c.bf16 %v23_v12, %v22_v11  ;;  %v84_v24 = vpack.c.bf16 %v25_v14, %v24_v13 }
   0x6   :  { %v51_v18 = vld [vmem:[%s2520_s0 + $0x118] sm:$0xff]  ;;  %v96_v20 = vpack.c.bf16 %v49_v16, %v48_v15  ;;  %v52_v22 = vld [vmem:[%s2520_s0 + $0x120] sm:$0xff]  ;;  %v53_v23 = vld [vmem:[%s2520_s0 + $0x128] sm:$0xff] }
   0x7   :  { %1677 = vmatpush3.bf16.msra.mxu0 %v1910_v1  ;;  %1905 = vmatpush3.bf16.msra.mxu1 %v1910_v1  ;;  %v97_v21 = vpack.c.bf16 %v51_v18, %v50_v17  ;;  %v98_v25 = vpack.c.bf16 %v53_v23, %v52_v22  ;;  %v26_v26 = vld [vmem:[%s2520_s0 + $0x50] sm:$0xff]  ;;  %v55_v28 = vld [vmem:[%s2520_s0 + $0x138] sm:$0xff]  ;;  %v56_v30 = vld [vmem:[%s2520_s0 + $0x140] sm:$0xff] }
   0x8   :  { %1710 = vmatprep.mubr.msk.bf16.mxu1 %vm133_vm0, %v96_v20  ;;  %v54_v27 = vld [vmem:[%s2520_s0 + $0x130] sm:$0xff]  ;;  %v27_v29 = vld [vmem:[%s2520_s0 + $0x58] sm:$0xff]  ;;  %v57_v31 = vld [vmem:[%s2520_s0 + $0x148] sm:$0xff] }
   0x9   :  { %v28_v32 = vld [vmem:[%s2520_s0 + $0x60] sm:$0xff]  ;;  %v29_v33 = vld [vmem:[%s2520_s0 + $0x68] sm:$0xff]  ;;  %v99_v34 = vpack.c.bf16 %v55_v28, %v54_v27  ;;  %v85_v35 = vpack.c.bf16 %v27_v29, %v26_v26  ;;  %v100_v36 = vpack.c.bf16 %v57_v31, %v56_v30  ;;  %v58_v38 = vld [vmem:[%s2520_s0 + $0x150] sm:$0xff] }
   0xa   :  { %1679 = vmatmul.mubr.msk.bf16.vlgmr.msra.gmra.mxu0 %vm133_vm0, %v81_v9  ;;  %1711 = vmatmul.mubr.msk.bf16.vlgmr.msra.gmra.mxu1 %vm133_vm0, %v97_v21  ;;  %v86_v37 = vpack.c.bf16 %v29_v33, %v28_v32  ;;  %v59_v39 = vld [vmem:[%s2520_s0 + $0x158] sm:$0xff]  ;;  %v1911_v40 = vld [vmem:[%s2521_s1 + $0x48] sm:$0xff]   ;;  %v30_v41 = vld [vmem:[%s2520_s0 + $0x70] sm:$0xff] }
   0xb   :  { %1682 = vmatprep.mubr.msk.bf16.mxu0 %vm133_vm0, %v82_v10  ;;  %1714 = vmatprep.mubr.msk.bf16.mxu1 %vm133_vm0, %v98_v25  ;;  %v31_v42 = vld [vmem:[%s2520_s0 + $0x78] sm:$0xff]  ;;  %v1912_v43 = vld [vmem:[%s2521_s1 + $0x40] sm:$0xff]   ;;  %v61_v46 = vld [vmem:[%s2520_s0 + $0x168] sm:$0xff]  ;;  %v101_v48 = vpack.c.bf16 %v59_v39, %v58_v38 }
   0xc   :  { %v32_v44 = vld [vmem:[%s2520_s0 + $0x80] sm:$0xff]  ;;  %1742 = vmatprep.subr.bf16.mxu1 %v1911_v40  ;;  %v33_v47 = vld [vmem:[%s2520_s0 + $0x88] sm:$0xff]  ;;  %v1913_v49 = vld [vmem:[%s2521_s1 + $0x38] sm:$0xff]   ;;  %v87_v50 = vpack.c.bf16 %v31_v42, %v30_v41 }
   0xd   :  { %v60_v45 = vld [vmem:[%s2520_s0 + $0x160] sm:$0xff]  ;;  %1743 = vmatpush3.bf16.msra.mxu1 %v1911_v40  ;;  %v88_v52 = vpack.c.bf16 %v33_v47, %v32_v44  ;;  %v1914_v53 = vld [vmem:[%s2521_s1 + $0x30] sm:$0xff]   ;;  %v63_v55 = vld [vmem:[%s2520_s0 + $0x178] sm:$0xff] }
   0xe   :  { %1744 = vmatprep.subr.bf16.mxu1 %v1912_v43  ;;  %v102_v51 = vpack.c.bf16 %v61_v46, %v60_v45  ;;  %v62_v54 = vld [vmem:[%s2520_s0 + $0x170] sm:$0xff]  ;;  %v35_v57 = vld [vmem:[%s2520_s0 + $0x98] sm:$0xff]  ;;  %v64_v58 = vld [vmem:[%s2520_s0 + $0x180] sm:$0xff] }
   0xf   :  { %v34_v56 = vld [vmem:[%s2520_s0 + $0x90] sm:$0xff]  ;;  %v65_v59 = vld [vmem:[%s2520_s0 + $0x188] sm:$0xff]  ;;  %v36_v60 = vld [vmem:[%s2520_s0 + $0xa0] sm:$0xff] }
  0x10   :  { %v37_v61 = vld [vmem:[%s2520_s0 + $0xa8] sm:$0xff] }
  0x11   :  { %1745 = vmatpush3.bf16.msra.mxu1 %v1912_v43 }
  0x12   :  { %1683 = vmatmul.mubr.msk.bf16.gmra.mxu0 %vm133_vm0, %v83_v19  ;;  %1715 = vmatmul.mubr.msk.bf16.gmra.mxu1 %vm133_vm0, %v99_v34 }
  0x13   :  { %1686 = vmatprep.mubr.msk.bf16.mxu0 %vm133_vm0, %v84_v24  ;;  %1718 = vmatprep.mubr.msk.bf16.mxu1 %vm133_vm0, %v100_v36 }
  0x14   :  { %1746 = vmatprep.subr.bf16.mxu1 %v1913_v49 }
  0x15   :  { %1747 = vmatpush3.bf16.msra.mxu1 %v1913_v49 }
  0x1a   :  { %1687 = vmatmul.mubr.msk.bf16.gmra.mxu0 %vm133_vm0, %v85_v35  ;;  %1719 = vmatmul.mubr.msk.bf16.gmra.mxu1 %vm133_vm0, %v101_v48 }
  0x1b   :  { %1690 = vmatprep.mubr.msk.bf16.mxu0 %vm133_vm0, %v86_v37  ;;  %1722 = vmatprep.mubr.msk.bf16.mxu1 %vm133_vm0, %v102_v51 }
  0x22   :  { %1691 = vmatmul.mubr.msk.bf16.gmra.mxu0 %vm133_vm0, %v87_v50 }
  0x23   :  { %1694 = vmatprep.mubr.msk.bf16.mxu0 %vm133_vm0, %v88_v52 }
  0x24   :  { %8 = vsyncpa [#allocation3], 0  ;;  %v103_v62 = vpack.c.bf16 %v63_v55, %v62_v54  ;;  %1748 = vmatprep.subr.bf16.mxu1 %v1914_v53  ;;  %v1915_v63 = vld [vmem:[%s2521_s1 + $0x28] sm:$0xff]   ;;  %v89_v0 = vpack.c.bf16 %v35_v57, %v34_v56  ;;  %v104_v1 = vpack.c.bf16 %v65_v59, %v64_v58  ;;  %v90_v2 = vpack.c.bf16 %v37_v61, %v36_v60  ;;  %v1916_v3 = vld [vmem:[%s2521_s1 + $0x20] sm:$0xff]  }
  0x25   :  { %1749 = vmatpush3.bf16.msra.mxu1 %v1914_v53  ;;  %v38_v4 = vld [vmem:[%s2520_s0 + $0xb0] sm:$0xff]  ;;  %v67_v6 = vld [vmem:[%s2520_s0 + $0x198] sm:$0xff]  ;;  %v68_v8 = vld [vmem:[%s2520_s0 + $0x1a0] sm:$0xff] }
  0x26   :  { %1723 = vmatmul.mubr.msk.bf16.gmra.mxu1 %vm133_vm0, %v103_v62  ;;  %1750 = vmatprep.subr.bf16.mxu1 %v1915_v63  ;;  %v66_v5 = vld [vmem:[%s2520_s0 + $0x190] sm:$0xff]  ;;  %v39_v7 = vld [vmem:[%s2520_s0 + $0xb8] sm:$0xff]  ;;  %v69_v9 = vld [vmem:[%s2520_s0 + $0x1a8] sm:$0xff] }
  0x27   :  { %1726 = vmatprep.mubr.msk.bf16.mxu1 %vm133_vm0, %v104_v1  ;;  %v40_v10 = vld [vmem:[%s2520_s0 + $0xc0] sm:$0xff]  ;;  %v41_v11 = vld [vmem:[%s2520_s0 + $0xc8] sm:$0xff]  ;;  %v105_v12 = vpack.c.bf16 %v67_v6, %v66_v5  ;;  %v1917_v13 = vld [vmem:[%s2521_s1 + $0x18] sm:$0xff]   ;;  %v91_v14 = vpack.c.bf16 %v39_v7, %v38_v4  ;;  %v106_v15 = vpack.c.bf16 %v69_v9, %v68_v8 }
  0x28   :  { %v92_v16 = vpack.c.bf16 %v41_v11, %v40_v10  ;;  %v42_v17 = vld [vmem:[%s2520_s0 + $0xd0] sm:$0xff]  ;;  %v71_v19 = vld [vmem:[%s2520_s0 + $0x1b8] sm:$0xff]  ;;  %v72_v21 = vld [vmem:[%s2520_s0 + $0x1c0] sm:$0xff] }
  0x29   :  { %1751 = vmatpush3.bf16.msra.mxu1 %v1915_v63  ;;  %v70_v18 = vld [vmem:[%s2520_s0 + $0x1b0] sm:$0xff]  ;;  %v43_v20 = vld [vmem:[%s2520_s0 + $0xd8] sm:$0xff]  ;;  %v73_v22 = vld [vmem:[%s2520_s0 + $0x1c8] sm:$0xff] }
  0x2a   :  { %1695 = vmatmul.mubr.msk.bf16.gmra.mxu0 %vm133_vm0, %v89_v0  ;;  %1752 = vmatprep.subr.bf16.mxu1 %v1916_v3  ;;  %v44_v23 = vld [vmem:[%s2520_s0 + $0xe0] sm:$0xff]  ;;  %v45_v24 = vld [vmem:[%s2520_s0 + $0xe8] sm:$0xff]  ;;  %v107_v25 = vpack.c.bf16 %v71_v19, %v70_v18  ;;  %v93_v26 = vpack.c.bf16 %v43_v20, %v42_v17  ;;  %v108_v27 = vpack.c.bf16 %v73_v22, %v72_v21  ;;  %v46_v29 = vld [vmem:[%s2520_s0 + $0xf0] sm:$0xff] }
  0x2b   :  { %1698 = vmatprep.mubr.msk.bf16.mxu0 %vm133_vm0, %v90_v2  ;;  %v94_v28 = vpack.c.bf16 %v45_v24, %v44_v23  ;;  %v74_v30 = vld [vmem:[%s2520_s0 + $0x1d0] sm:$0xff]  ;;  %v75_v31 = vld [vmem:[%s2520_s0 + $0x1d8] sm:$0xff]  ;;  %v76_v33 = vld [vmem:[%s2520_s0 + $0x1e0] sm:$0xff] }
  0x2c   :  { %v47_v32 = vld [vmem:[%s2520_s0 + $0xf8] sm:$0xff]  ;;  %v77_v34 = vld [vmem:[%s2520_s0 + $0x1e8] sm:$0xff]  ;;  %v109_v35 = vpack.c.bf16 %v75_v31, %v74_v30  ;;  %v78_v38 = vld [vmem:[%s2520_s0 + $0x1f0] sm:$0xff] }
  0x2d   :  { %1753 = vmatpush3.bf16.msra.mxu1 %v1916_v3  ;;  %v95_v36 = vpack.c.bf16 %v47_v32, %v46_v29  ;;  %v110_v37 = vpack.c.bf16 %v77_v34, %v76_v33  ;;  %v79_v39 = vld [vmem:[%s2520_s0 + $0x1f8] sm:$0xff]  ;;  %v1918_v41 = vld [vmem:[%s2521_s1 + $0x10] sm:$0xff]   ;;  %v2229_v44 = vld [vmem:[%s2522_s2] ss:$0 sm:$0xff] }
  0x2e   :  { %1727 = vmatmul.mubr.msk.bf16.gmra.mxu1 %vm133_vm0, %v105_v12  ;;  %1754 = vmatprep.subr.bf16.mxu1 %v1917_v13  ;;  %v111_v40 = vpack.c.bf16 %v79_v39, %v78_v38  ;;  %v1919_v50 = vld [vmem:[%s2521_s1 + $0x88] sm:$0xff]   ;;  %v1920_v51 = vld [vmem:[%s2521_s1 + $0x80] sm:$0xff]   ;;  %v1921_v61 = vld [vmem:[%s2521_s1 + $0x78] sm:$0xff]  }
  0x2f   :  { %1730 = vmatprep.mubr.msk.bf16.mxu1 %vm133_vm0, %v106_v15  ;;  %1822 = vmatprep.subr.bf16.mxu0 %v1919_v50  ;;  %v1922_v7 = vld [vmem:[%s2521_s1 + $0x70] sm:$0xff]   ;;  %v1923_v17 = vld [vmem:[%s2521_s1 + $0x68] sm:$0xff]  }
  0x30   :  { %1823 = vmatpush3.bf16.msra.mxu0 %v1919_v50 }
  0x31   :  { %1755 = vmatpush3.bf16.msra.mxu1 %v1917_v13  ;;  %1824 = vmatprep.subr.bf16.mxu0 %v1920_v51 }
  0x32   :  { %1699 = vmatmul.mubr.msk.bf16.gmra.mxu0 %vm133_vm0, %v91_v14  ;;  %1756 = vmatprep.subr.bf16.mxu1 %v1918_v41 }
  0x33   :  { %1702 = vmatprep.mubr.msk.bf16.mxu0 %vm133_vm0, %v92_v16 }
  0x34   :  { %1825 = vmatpush3.bf16.msra.mxu0 %v1920_v51 }
  0x35   :  { %1757 = vmatpush3.bf16.msra.mxu1 %v1918_v41  ;;  %1826 = vmatprep.subr.bf16.mxu0 %v1921_v61 }
  0x36   :  { %1731 = vmatmul.mubr.msk.bf16.gmra.mxu1 %vm133_vm0, %v107_v25 }
  0x37   :  { %1734 = vmatprep.mubr.msk.bf16.mxu1 %vm133_vm0, %v108_v27  ;;  %v1924_v27 = vld [vmem:[%s2521_s1 + $0x60] sm:$0xff]  }
  0x38   :  { %1827 = vmatpush3.bf16.msra.mxu0 %v1921_v61 }
  0x39   :  { %1828 = vmatprep.subr.bf16.mxu0 %v1922_v7 }
  0x3a   :  { %1703 = vmatmul.mubr.msk.bf16.gmra.mxu0 %vm133_vm0, %v93_v26 }
  0x3b   :  { %1706 = vmatprep.mubr.msk.bf16.mxu0 %vm133_vm0, %v94_v28 }
  0x3c   :  { %1829 = vmatpush3.bf16.msra.mxu0 %v1922_v7 }
  0x3d   :  { %1830 = vmatprep.subr.bf16.mxu0 %v1923_v17 }
  0x3e   :  { %1735 = vmatmul.mubr.msk.bf16.gmra.mxu1 %vm133_vm0, %v109_v35 }
  0x3f   :  { %1738 = vmatprep.mubr.msk.bf16.mxu1 %vm133_vm0, %v110_v37  ;;  %v1925_v37 = vld [vmem:[%s2521_s1 + $0x58] sm:$0xff]  }
  0x40   :  { %1831 = vmatpush3.bf16.msra.mxu0 %v1923_v17 }
  0x41   :  { %1832 = vmatprep.subr.bf16.mxu0 %v1924_v27 }
  0x42   :  { %1707 = vmatmul.mubr.msk.bf16.gmra.mxu0 %vm133_vm0, %v95_v36 }
  0x44   :  { %1833 = vmatpush3.bf16.msra.mxu0 %v1924_v27 }
  0x45   :  { %1834 = vmatprep.subr.bf16.mxu0 %v1925_v37 }
  0x46   :  { %1739 = vmatmul.mubr.msk.bf16.gmra.mxu1 %vm133_vm0, %v111_v40 }
  0x48   :  { %1835 = vmatpush3.bf16.msra.mxu0 %v1925_v37 }
  0xca   :  { %v1680_v42 = vpop.f32.mrf.mxu0  ;;  %v2241_v53 = vpop.f32.mrf.mxu1 }
  0xcb   :  { %v273_v48 = vadd.f32 %v1680_v42, %v2229_v44 }
  0xcc   :  { %v264_v43 = vpop.f32.mrf.mxu0  ;;  %v2243_v58 = vpop.f32.mrf.mxu1 }
  0xcd   :  { %v265_v46 = vadd.f32 %v2229_v44, %v264_v43  ;;  %v521_v59 = vmax.f32 %v273_v48, 0.0 }
  0xce   :  { %v1681_v45 = vpop.f32.mrf.mxu0  ;;  %v2248_v63 = vpop.f32.mrf.mxu1 }
  0xcf   :  { %v276_v47 = vadd.f32 %v1681_v45, %v2229_v44  ;;  %v519_v56 = vmax.f32 %v265_v46, 0.0 }
  0xd0   :  { %v267_v49 = vpop.f32.mrf.mxu0  ;;  %v2252_v4 = vpop.f32.mrf.mxu1 }
  0xd1   :  { %v268_v52 = vadd.f32 %v2229_v44, %v267_v49  ;;  %v522_v54 = vmax.f32 %v276_v47, 0.0 }
  0xd2   :  { %v1684_v55 = vpop.f32.mrf.mxu0  ;;  %v2259_v9 = vpop.f32.mrf.mxu1 }
  0xd3   :  { %v520_v57 = vmax.f32 %v268_v52, 0.0  ;;  %v584_v0 = vpack.c.bf16 %v522_v54, %v521_v59  ;;  %v289_v5 = vadd.f32 %v1684_v55, %v2229_v44 }
  0xd4   :  { %v280_v60 = vpop.f32.mrf.mxu0  ;;  %v2261_v14 = vpop.f32.mrf.mxu1 }
  0xd5   :  { %v583_v62 = vpack.c.bf16 %v520_v57, %v519_v56  ;;  %v281_v2 = vadd.f32 %v2229_v44, %v280_v60  ;;  %v525_v15 = vmax.f32 %v289_v5, 0.0 }
  0xd6   :  { %v1685_v1 = vpop.f32.mrf.mxu0  ;;  %v2266_v19 = vpop.f32.mrf.mxu1 }
  0xd7   :  { %v292_v3 = vadd.f32 %v1685_v1, %v2229_v44  ;;  %1758 = vmatprep.mubr.bf16.mxu1 %v583_v62  ;;  %v523_v12 = vmax.f32 %v281_v2, 0.0 }
  0xd8   :  { %v283_v6 = vpop.f32.mrf.mxu0  ;;  %1759 = vmatmul.mubr.bf16.vlgmr.msra.gmra.mxu1 %v584_v0  ;;  %v2270_v24 = vpop.f32.mrf.mxu1 }
  0xd9   :  { %v284_v8 = vadd.f32 %v2229_v44, %v283_v6  ;;  %v526_v10 = vmax.f32 %v292_v3, 0.0 }
  0xda   :  { %v1688_v11 = vpop.f32.mrf.mxu0  ;;  %v2277_v29 = vpop.f32.mrf.mxu1 }
  0xdb   :  { %v524_v13 = vmax.f32 %v284_v8, 0.0  ;;  %v586_v20 = vpack.c.bf16 %v526_v10, %v525_v15  ;;  %v305_v25 = vadd.f32 %v1688_v11, %v2229_v44 }
  0xdc   :  { %v296_v16 = vpop.f32.mrf.mxu0  ;;  %v2279_v34 = vpop.f32.mrf.mxu1 }
  0xdd   :  { %v585_v18 = vpack.c.bf16 %v524_v13, %v523_v12  ;;  %v297_v22 = vadd.f32 %v2229_v44, %v296_v16  ;;  %v529_v35 = vmax.f32 %v305_v25, 0.0 }
  0xde   :  { %v1689_v21 = vpop.f32.mrf.mxu0  ;;  %v2284_v41 = vpop.f32.mrf.mxu1 }
  0xdf   :  { %v308_v23 = vadd.f32 %v1689_v21, %v2229_v44  ;;  %1762 = vmatprep.mubr.bf16.mxu1 %v585_v18  ;;  %v527_v32 = vmax.f32 %v297_v22, 0.0 }
  0xe0   :  { %v299_v26 = vpop.f32.mrf.mxu0  ;;  %1763 = vmatmul.mubr.bf16.gmra.mxu1 %v586_v20  ;;  %v2290_v50 = vpop.f32.mrf.mxu1 }
  0xe1   :  { %v300_v28 = vadd.f32 %v2229_v44, %v299_v26  ;;  %v530_v30 = vmax.f32 %v308_v23, 0.0 }
  0xe2   :  { %v1692_v31 = vpop.f32.mrf.mxu0 }
  0xe3   :  { %v528_v33 = vmax.f32 %v300_v28, 0.0  ;;  %v588_v39 = vpack.c.bf16 %v530_v30, %v529_v35  ;;  %v321_v45 = vadd.f32 %v1692_v31, %v2229_v44 }
  0xe4   :  { %v312_v36 = vpop.f32.mrf.mxu0 }
  0xe5   :  { %v587_v38 = vpack.c.bf16 %v528_v33, %v527_v32  ;;  %v313_v42 = vadd.f32 %v2229_v44, %v312_v36  ;;  %v533_v54 = vmax.f32 %v321_v45, 0.0 }
  0xe6   :  { %v1693_v40 = vpop.f32.mrf.mxu0  ;;  %v2292_v60 = vpop.f32.mrf.mxu1 }
  0xe7   :  { %v324_v43 = vadd.f32 %v1693_v40, %v2229_v44  ;;  %1766 = vmatprep.mubr.bf16.mxu1 %v587_v38  ;;  %v531_v51 = vmax.f32 %v313_v42, 0.0 }
  0xe8   :  { %v315_v46 = vpop.f32.mrf.mxu0  ;;  %1767 = vmatmul.mubr.bf16.gmra.mxu1 %v588_v39  ;;  %v2298_v6 = vpop.f32.mrf.mxu1 }
  0xe9   :  { %v316_v47 = vadd.f32 %v2229_v44, %v315_v46  ;;  %v534_v48 = vmax.f32 %v324_v43, 0.0 }
  0xea   :  { %v1696_v49 = vpop.f32.mrf.mxu0  ;;  %v2300_v16 = vpop.f32.mrf.mxu1 }
  0xeb   :  { %v532_v52 = vmax.f32 %v316_v47, 0.0  ;;  %v590_v57 = vpack.c.bf16 %v534_v48, %v533_v54  ;;  %v337_v0 = vadd.f32 %v1696_v49, %v2229_v44  ;;  %v393_v54 = vadd.f32 %v2229_v44, %v2243_v58 }
  0xec   :  { %v328_v55 = vpop.f32.mrf.mxu0  ;;  %v2306_v26 = vpop.f32.mrf.mxu1 }
  0xed   :  { %v589_v56 = vpack.c.bf16 %v532_v52, %v531_v51  ;;  %v329_v61 = vadd.f32 %v2229_v44, %v328_v55  ;;  %v537_v10 = vmax.f32 %v337_v0, 0.0  ;;  %v396_v55 = vadd.f32 %v2229_v44, %v2252_v4 }
  0xee   :  { %v1697_v59 = vpop.f32.mrf.mxu0  ;;  %v2308_v36 = vpop.f32.mrf.mxu1 }
  0xef   :  { %v340_v62 = vadd.f32 %v1697_v59, %v2229_v44  ;;  %1770 = vmatprep.mubr.bf16.mxu1 %v589_v56  ;;  %v535_v7 = vmax.f32 %v329_v61, 0.0  ;;  %v552_v58 = vmax.f32 %v396_v55, 0.0  ;;  %v452_v55 = vadd.f32 %v2300_v16, %v2229_v44 }
  0xf0   :  { %v331_v1 = vpop.f32.mrf.mxu0  ;;  %1771 = vmatmul.mubr.bf16.gmra.mxu1 %v590_v57  ;;  %v2314_v46 = vpop.f32.mrf.mxu1 }
  0xf1   :  { %v332_v2 = vadd.f32 %v2229_v44, %v331_v1  ;;  %v538_v3 = vmax.f32 %v340_v62, 0.0 }
  0xf2   :  { %v1700_v5 = vpop.f32.mrf.mxu0  ;;  %v2320_v59 = vpop.f32.mrf.mxu1 }
  0xf3   :  { %v536_v8 = vmax.f32 %v332_v2, 0.0  ;;  %v592_v13 = vpack.c.bf16 %v538_v3, %v537_v10  ;;  %v353_v20 = vadd.f32 %v1700_v5, %v2229_v44  ;;  %v551_v2 = vmax.f32 %v393_v54, 0.0 }
  0xf4   :  { %v344_v11 = vpop.f32.mrf.mxu0  ;;  %v449_v54 = vadd.f32 %v2292_v60, %v2229_v44  ;;  %v465_v60 = vadd.f32 %v2308_v36, %v2229_v44  ;;  %v468_v16 = vadd.f32 %v2320_v59, %v2229_v44 }
  0xf5   :  { %v591_v12 = vpack.c.bf16 %v536_v8, %v535_v7  ;;  %v345_v17 = vadd.f32 %v2229_v44, %v344_v11  ;;  %v541_v30 = vmax.f32 %v353_v20, 0.0  ;;  %v459_v7 = vpop.f32.mrf.mxu1  ;;  %v404_v20 = vadd.f32 %v2248_v63, %v2229_v44 }
  0xf6   :  { %v1701_v15 = vpop.f32.mrf.mxu0  ;;  %v417_v63 = vadd.f32 %v2259_v9, %v2229_v44  ;;  %v433_v9 = vadd.f32 %v2277_v29, %v2229_v44  ;;  %v457_v29 = vadd.f32 %v2229_v44, %v2314_v46 }
  0xf7   :  { %v356_v18 = vadd.f32 %v1701_v15, %v2229_v44  ;;  %1774 = vmatprep.mubr.bf16.mxu1 %v591_v12  ;;  %v539_v27 = vmax.f32 %v345_v17, 0.0  ;;  %v599_v12 = vpack.c.bf16 %v552_v58, %v551_v2  ;;  %v412_v15 = vadd.f32 %v2229_v44, %v2270_v24 }
  0xf8   :  { %v347_v21 = vpop.f32.mrf.mxu0  ;;  %1775 = vmatmul.mubr.bf16.gmra.mxu1 %v592_v13  ;;  %v409_v13 = vadd.f32 %v2229_v44, %v2261_v14  ;;  %v401_v17 = vadd.f32 %v2241_v53, %v2229_v44  ;;  %v425_v24 = vadd.f32 %v2229_v44, %v2279_v34  ;;  %v428_v53 = vadd.f32 %v2229_v44, %v2290_v50 }
  0xf9   :  { %v348_v22 = vadd.f32 %v2229_v44, %v347_v21  ;;  %v542_v23 = vmax.f32 %v356_v18, 0.0  ;;  %v2334_v21 = vpop.f32.mrf.mxu1  ;;  %v441_v34 = vadd.f32 %v2229_v44, %v2298_v6  ;;  %v444_v50 = vadd.f32 %v2229_v44, %v2306_v26 }
  0xfa   :  { %v1704_v25 = vpop.f32.mrf.mxu0  ;;  %v561_v6 = vmax.f32 %v433_v9, 0.0  ;;  %v481_v36 = vadd.f32 %v2334_v21, %v2229_v44 }
  0xfb   :  { %v540_v28 = vmax.f32 %v348_v22, 0.0  ;;  %v594_v33 = vpack.c.bf16 %v542_v23, %v541_v30  ;;  %v369_v39 = vadd.f32 %v1704_v25, %v2229_v44  ;;  %v555_v22 = vmax.f32 %v409_v13, 0.0  ;;  %v472_v14 = vpop.f32.mrf.mxu1 }
  0xfc   :  { %v360_v31 = vpop.f32.mrf.mxu0  ;;  %v556_v23 = vmax.f32 %v412_v15, 0.0  ;;  %v553_v25 = vmax.f32 %v401_v17, 0.0  ;;  %v473_v46 = vadd.f32 %v2229_v44, %v472_v14 }
  0xfd   :  { %v593_v32 = vpack.c.bf16 %v540_v28, %v539_v27  ;;  %v361_v37 = vadd.f32 %v2229_v44, %v360_v31  ;;  %v545_v49 = vmax.f32 %v369_v39, 0.0  ;;  %v554_v27 = vmax.f32 %v404_v20, 0.0 }
  0xfe   :  { %v1705_v35 = vpop.f32.mrf.mxu0  ;;  %v601_v28 = vpack.c.bf16 %v556_v23, %v555_v22  ;;  %v420_v31 = vadd.f32 %v2266_v19, %v2229_v44  ;;  %v436_v19 = vadd.f32 %v2284_v41, %v2229_v44  ;;  %v460_v41 = vadd.f32 %v2229_v44, %v459_v7 }
  0xff   :  { %v372_v38 = vadd.f32 %v1705_v35, %v2229_v44  ;;  %1778 = vmatprep.mubr.bf16.mxu1 %v593_v32  ;;  %v543_v47 = vmax.f32 %v361_v37, 0.0  ;;  %v600_v30 = vpack.c.bf16 %v554_v27, %v553_v25  ;;  %v1733_v32 = vpop.f32.mrf.mxu1  ;;  %v560_v35 = vmax.f32 %v428_v53, 0.0 }
 0x100   :  { %v363_v40 = vpop.f32.mrf.mxu0  ;;  %1779 = vmatmul.mubr.bf16.gmra.mxu1 %v594_v33  ;;  %v559_v33 = vmax.f32 %v425_v24, 0.0  ;;  %v557_v37 = vmax.f32 %v417_v63, 0.0  ;;  %v571_v7 = vmax.f32 %v473_v46, 0.0  ;;  %v573_v23 = vmax.f32 %v481_v36, 0.0 }
 0x101   :  { %v364_v42 = vadd.f32 %v2229_v44, %v363_v40  ;;  %v546_v43 = vmax.f32 %v372_v38, 0.0  ;;  %v558_v38 = vmax.f32 %v420_v31, 0.0  ;;  %v475_v39 = vpop.f32.mrf.mxu1 }
 0x102   :  { %v1708_v45 = vpop.f32.mrf.mxu0  ;;  %v603_v40 = vpack.c.bf16 %v560_v35, %v559_v33 }
 0x103   :  { %v544_v48 = vmax.f32 %v364_v42, 0.0  ;;  %v596_v56 = vpack.c.bf16 %v546_v43, %v545_v49  ;;  %v385_v0 = vadd.f32 %v1708_v45, %v2229_v44  ;;  %v602_v42 = vpack.c.bf16 %v558_v38, %v557_v37  ;;  %v1736_v43 = vpop.f32.mrf.mxu1  ;;  %v1926_v45 = vld [vmem:[%s2521_s1 + $0x50] sm:$0xff]  }
 0x104   :  { %v376_v51 = vpop.f32.mrf.mxu0  ;;  %v562_v49 = vmax.f32 %v436_v19, 0.0  ;;  %1836 = vmatprep.subr.bf16.mxu0 %v1926_v45  ;;  %v2382_v19 = vld [vmem:[%s2522_s2 + $0x1] ss:$0 sm:$0xff] }
 0x105   :  { %v595_v52 = vpack.c.bf16 %v544_v48, %v543_v47  ;;  %v377_v61 = vadd.f32 %v2229_v44, %v376_v51  ;;  %v549_v10 = vmax.f32 %v385_v0, 0.0  ;;  %v563_v47 = vmax.f32 %v441_v34, 0.0  ;;  %v488_v51 = vpop.f32.mrf.mxu1  ;;  %1837 = vmatpush3.bf16.msra.mxu0 %v1926_v45 }
 0x106   :  { %v1709_v57 = vpop.f32.mrf.mxu0  ;;  %v564_v48 = vmax.f32 %v444_v50, 0.0  ;;  %v566_v0 = vmax.f32 %v452_v55, 0.0  ;;  %v489_v13 = vadd.f32 %v2229_v44, %v488_v51 }
 0x107   :  { %v388_v62 = vadd.f32 %v1709_v57, %v2229_v44  ;;  %1782 = vmatprep.mubr.bf16.mxu1 %v595_v52  ;;  %v547_v4 = vmax.f32 %v377_v61, 0.0  ;;  %v604_v52 = vpack.c.bf16 %v562_v49, %v561_v6  ;;  %v567_v57 = vmax.f32 %v457_v29, 0.0 }
 0x108   :  { %v379_v1 = vpop.f32.mrf.mxu0  ;;  %1783 = vmatmul.mubr.bf16.gmra.mxu1 %v596_v56  ;;  %v605_v26 = vpack.c.bf16 %v564_v48, %v563_v47  ;;  %v1737_v56 = vpop.f32.mrf.mxu1  ;;  %v568_v61 = vmax.f32 %v460_v41, 0.0  ;;  %v575_v20 = vmax.f32 %v489_v13, 0.0 }
 0x109   :  { %v380_v3 = vadd.f32 %v2229_v44, %v379_v1  ;;  %v550_v5 = vmax.f32 %v388_v62, 0.0  ;;  %v565_v62 = vmax.f32 %v449_v54, 0.0  ;;  %v500_v21 = vadd.f32 %v1737_v56, %v2229_v44 }
 0x10a   :  { %v491_v1 = vpop.f32.mrf.mxu1  ;;  %v607_v2 = vpack.c.bf16 %v568_v61, %v567_v57 }
 0x10b   :  { %v548_v8 = vmax.f32 %v380_v3, 0.0  ;;  %v598_v18 = vpack.c.bf16 %v550_v5, %v549_v10  ;;  %v476_v3 = vadd.f32 %v2229_v44, %v475_v39  ;;  %v606_v58 = vpack.c.bf16 %v566_v0, %v565_v62 }
 0x10c   :  { %v1740_v5 = vpop.f32.mrf.mxu1  ;;  %v570_v10 = vmax.f32 %v468_v16, 0.0  ;;  %v492_v15 = vadd.f32 %v2229_v44, %v491_v1  ;;  %v578_v33 = vmax.f32 %v500_v21, 0.0 }
 0x10d   :  { %v597_v11 = vpack.c.bf16 %v548_v8, %v547_v4  ;;  %v572_v4 = vmax.f32 %v476_v3, 0.0  ;;  %v569_v8 = vmax.f32 %v465_v60, 0.0  ;;  %v513_v38 = vadd.f32 %v1740_v5, %v2229_v44 }
 0x10e   :  { %v576_v22 = vmax.f32 %v492_v15, 0.0 }
 0x10f   :  { %1786 = vmatprep.mubr.bf16.mxu1 %v597_v11  ;;  %v504_v11 = vpop.f32.mrf.mxu1  ;;  %v608_v17 = vpack.c.bf16 %v570_v10, %v569_v8 }
 0x110   :  { %1787 = vmatmul.mubr.bf16.gmra.mxu1 %v598_v18  ;;  %v484_v18 = vadd.f32 %v1733_v32, %v2229_v44  ;;  %v611_v14 = vpack.c.bf16 %v576_v22, %v575_v20 }
 0x111   :  { %1790 = vmatprep.mubr.bf16.mxu1 %v599_v12  ;;  %v609_v12 = vpack.c.bf16 %v572_v4, %v571_v7  ;;  %v1741_v59 = vpop.f32.mrf.mxu1 }
 0x112   :  { %v574_v25 = vmax.f32 %v484_v18, 0.0  ;;  %v516_v39 = vadd.f32 %v1741_v59, %v2229_v44 }
 0x113   :  { %v507_v27 = vpop.f32.mrf.mxu1 }
 0x114   :  { %v508_v24 = vadd.f32 %v2229_v44, %v507_v27  ;;  %v610_v53 = vpack.c.bf16 %v574_v25, %v573_v23  ;;  %v582_v34 = vmax.f32 %v516_v39, 0.0 }
 0x116   :  { %v580_v31 = vmax.f32 %v508_v24, 0.0 }
 0x118   :  { %1791 = vmatmul.mubr.bf16.gmra.mxu1 %v600_v30  ;;  %v497_v30 = vadd.f32 %v1736_v43, %v2229_v44 }
 0x119   :  { %1794 = vmatprep.mubr.bf16.mxu1 %v601_v28  ;;  %v505_v28 = vadd.f32 %v2229_v44, %v504_v11 }
 0x11a   :  { %v577_v32 = vmax.f32 %v497_v30, 0.0 }
 0x11b   :  { %v579_v63 = vmax.f32 %v505_v28, 0.0 }
 0x11c   :  { %v612_v37 = vpack.c.bf16 %v578_v33, %v577_v32 }
 0x11d   :  { %v613_v35 = vpack.c.bf16 %v580_v31, %v579_v63 }
 0x120   :  { %1795 = vmatmul.mubr.bf16.gmra.mxu1 %v602_v42 }
 0x121   :  { %1798 = vmatprep.mubr.bf16.mxu1 %v603_v40  ;;  %v581_v40 = vmax.f32 %v513_v38, 0.0 }
 0x123   :  { %v614_v50 = vpack.c.bf16 %v582_v34, %v581_v40 }
 0x128   :  { %1799 = vmatmul.mubr.bf16.gmra.mxu1 %v604_v52 }
 0x129   :  { %1802 = vmatprep.mubr.bf16.mxu1 %v605_v26 }
 0x130   :  { %1803 = vmatmul.mubr.bf16.gmra.mxu1 %v606_v58 }
 0x131   :  { %1806 = vmatprep.mubr.bf16.mxu1 %v607_v2 }
 0x138   :  { %1807 = vmatmul.mubr.bf16.gmra.mxu1 %v608_v17 }
 0x139   :  { %1810 = vmatprep.mubr.bf16.mxu1 %v609_v12 }
 0x140   :  { %1811 = vmatmul.mubr.bf16.gmra.mxu1 %v610_v53 }
 0x141   :  { %1814 = vmatprep.mubr.bf16.mxu1 %v611_v14 }
 0x148   :  { %1815 = vmatmul.mubr.bf16.gmra.mxu1 %v612_v37 }
 0x149   :  { %1818 = vmatprep.mubr.bf16.mxu1 %v613_v35 }
 0x150   :  { %1819 = vmatmul.mubr.bf16.gmra.mxu1 %v614_v50 }
 0x198   :  { %v1760_v42 = vpop.f32.mrf.mxu1 }
 0x199   :  { %v727_v44 = vadd.f32 %v1760_v42, %v2382_v19 }
 0x19a   :  { %v718_v9 = vpop.f32.mrf.mxu1 }
 0x19b   :  { %v719_v45 = vadd.f32 %v2382_v19, %v718_v9  ;;  %v975_v41 = vmax.f32 %v727_v44, 0.0 }
 0x19c   :  { %v1761_v43 = vpop.f32.mrf.mxu1 }
 0x19d   :  { %v730_v47 = vadd.f32 %v1761_v43, %v2382_v19  ;;  %v973_v26 = vmax.f32 %v719_v45, 0.0 }
 0x19e   :  { %v721_v48 = vpop.f32.mrf.mxu1 }
 0x19f   :  { %v722_v6 = vadd.f32 %v2382_v19, %v721_v48  ;;  %v976_v49 = vmax.f32 %v730_v47, 0.0 }
 0x1a0   :  { %v1764_v51 = vpop.f32.mrf.mxu1 }
 0x1a1   :  { %v974_v29 = vmax.f32 %v722_v6, 0.0  ;;  %v1038_v55 = vpack.c.bf16 %v976_v49, %v975_v41  ;;  %v743_v62 = vadd.f32 %v1764_v51, %v2382_v19 }
 0x1a2   :  { %v734_v52 = vpop.f32.mrf.mxu1 }
 0x1a3   :  { %v1037_v54 = vpack.c.bf16 %v974_v29, %v973_v26  ;;  %v735_v57 = vadd.f32 %v2382_v19, %v734_v52  ;;  %v979_v60 = vmax.f32 %v743_v62, 0.0 }
 0x1a4   :  { %v1765_v56 = vpop.f32.mrf.mxu1 }
 0x1a5   :  { %v746_v61 = vadd.f32 %v1765_v56, %v2382_v19  ;;  %1838 = vmatprep.mubr.bf16.mxu0 %v1037_v54  ;;  %v977_v3 = vmax.f32 %v735_v57, 0.0 }
 0x1a6   :  { %v737_v0 = vpop.f32.mrf.mxu1  ;;  %1839 = vmatmul.mubr.bf16.vlgmr.msra.gmra.mxu0 %v1038_v55 }
 0x1a7   :  { %v738_v1 = vadd.f32 %v2382_v19, %v737_v0  ;;  %v980_v2 = vmax.f32 %v746_v61, 0.0 }
 0x1a8   :  { %v1768_v46 = vpop.f32.mrf.mxu1 }
 0x1a9   :  { %v978_v58 = vmax.f32 %v738_v1, 0.0  ;;  %v1040_v7 = vpack.c.bf16 %v980_v2, %v979_v60  ;;  %v759_v11 = vadd.f32 %v1768_v46, %v2382_v19 }
 0x1aa   :  { %v750_v16 = vpop.f32.mrf.mxu1 }
 0x1ab   :  { %v1039_v5 = vpack.c.bf16 %v978_v58, %v977_v3  ;;  %v751_v8 = vadd.f32 %v2382_v19, %v750_v16  ;;  %v983_v59 = vmax.f32 %v759_v11, 0.0 }
 0x1ac   :  { %v1769_v4 = vpop.f32.mrf.mxu1 }
 0x1ad   :  { %v762_v10 = vadd.f32 %v1769_v4, %v2382_v19  ;;  %1842 = vmatprep.mubr.bf16.mxu0 %v1039_v5  ;;  %v981_v36 = vmax.f32 %v751_v8, 0.0 }
 0x1ae   :  { %v753_v12 = vpop.f32.mrf.mxu1  ;;  %1843 = vmatmul.mubr.bf16.gmra.mxu0 %v1040_v7 }
 0x1af   :  { %v754_v13 = vadd.f32 %v2382_v19, %v753_v12  ;;  %v984_v15 = vmax.f32 %v762_v10, 0.0 }
 0x1b0   :  { %v1772_v17 = vpop.f32.mrf.mxu1 }
 0x1b1   :  { %v982_v18 = vmax.f32 %v754_v13, 0.0  ;;  %v1042_v23 = vpack.c.bf16 %v984_v15, %v983_v59  ;;  %v775_v28 = vadd.f32 %v1772_v17, %v2382_v19 }
 0x1b2   :  { %v766_v20 = vpop.f32.mrf.mxu1 }
 0x1b3   :  { %v1041_v22 = vpack.c.bf16 %v982_v18, %v981_v36  ;;  %v767_v27 = vadd.f32 %v2382_v19, %v766_v20  ;;  %v987_v32 = vmax.f32 %v775_v28, 0.0 }
 0x1b4   :  { %v1773_v25 = vpop.f32.mrf.mxu1 }
 0x1b5   :  { %v778_v14 = vadd.f32 %v1773_v25, %v2382_v19  ;;  %1846 = vmatprep.mubr.bf16.mxu0 %v1041_v22  ;;  %v985_v63 = vmax.f32 %v767_v27, 0.0 }
 0x1b6   :  { %v769_v24 = vpop.f32.mrf.mxu1  ;;  %1847 = vmatmul.mubr.bf16.gmra.mxu0 %v1042_v23 }
 0x1b7   :  { %v770_v53 = vadd.f32 %v2382_v19, %v769_v24  ;;  %v988_v30 = vmax.f32 %v778_v14, 0.0 }
 0x1b8   :  { %v1776_v21 = vpop.f32.mrf.mxu1 }
 0x1b9   :  { %v986_v31 = vmax.f32 %v770_v53, 0.0  ;;  %v1044_v37 = vpack.c.bf16 %v988_v30, %v987_v32  ;;  %v791_v34 = vadd.f32 %v1776_v21, %v2382_v19 }
 0x1ba   :  { %v782_v33 = vpop.f32.mrf.mxu1 }
 0x1bb   :  { %v1043_v35 = vpack.c.bf16 %v986_v31, %v985_v63  ;;  %v783_v39 = vadd.f32 %v2382_v19, %v782_v33  ;;  %v991_v44 = vmax.f32 %v791_v34, 0.0 }
 0x1bc   :  { %v1777_v38 = vpop.f32.mrf.mxu1 }
 0x1bd   :  { %v794_v40 = vadd.f32 %v1777_v38, %v2382_v19  ;;  %1850 = vmatprep.mubr.bf16.mxu0 %v1043_v35  ;;  %v989_v45 = vmax.f32 %v783_v39, 0.0 }
 0x1be   :  { %v785_v50 = vpop.f32.mrf.mxu1  ;;  %1851 = vmatmul.mubr.bf16.gmra.mxu0 %v1044_v37 }
 0x1bf   :  { %v786_v42 = vadd.f32 %v2382_v19, %v785_v50  ;;  %v992_v9 = vmax.f32 %v794_v40, 0.0 }
 0x1c0   :  { %v1780_v43 = vpop.f32.mrf.mxu1 }
 0x1c1   :  { %v990_v47 = vmax.f32 %v786_v42, 0.0  ;;  %v1046_v49 = vpack.c.bf16 %v992_v9, %v991_v44  ;;  %v807_v41 = vadd.f32 %v1780_v43, %v2382_v19 }
 0x1c2   :  { %v798_v48 = vpop.f32.mrf.mxu1 }
 0x1c3   :  { %v1045_v6 = vpack.c.bf16 %v990_v47, %v989_v45  ;;  %v799_v26 = vadd.f32 %v2382_v19, %v798_v48  ;;  %v995_v62 = vmax.f32 %v807_v41, 0.0 }
 0x1c4   :  { %v1781_v51 = vpop.f32.mrf.mxu1 }
 0x1c5   :  { %v810_v29 = vadd.f32 %v1781_v51, %v2382_v19  ;;  %1854 = vmatprep.mubr.bf16.mxu0 %v1045_v6  ;;  %v993_v57 = vmax.f32 %v799_v26, 0.0 }
 0x1c6   :  { %v801_v52 = vpop.f32.mrf.mxu1  ;;  %1855 = vmatmul.mubr.bf16.gmra.mxu0 %v1046_v49 }
 0x1c7   :  { %v802_v54 = vadd.f32 %v2382_v19, %v801_v52  ;;  %v996_v55 = vmax.f32 %v810_v29, 0.0 }
 0x1c8   :  { %v1784_v56 = vpop.f32.mrf.mxu1 }
 0x1c9   :  { %v994_v61 = vmax.f32 %v802_v54, 0.0  ;;  %v1048_v2 = vpack.c.bf16 %v996_v55, %v995_v62  ;;  %v823_v60 = vadd.f32 %v1784_v56, %v2382_v19 }
 0x1ca   :  { %v814_v0 = vpop.f32.mrf.mxu1 }
 0x1cb   :  { %v1047_v1 = vpack.c.bf16 %v994_v61, %v993_v57  ;;  %v815_v3 = vadd.f32 %v2382_v19, %v814_v0  ;;  %v999_v11 = vmax.f32 %v823_v60, 0.0 }
 0x1cc   :  { %v1785_v46 = vpop.f32.mrf.mxu1 }
 0x1cd   :  { %v826_v58 = vadd.f32 %v1785_v46, %v2382_v19  ;;  %1858 = vmatprep.mubr.bf16.mxu0 %v1047_v1  ;;  %v997_v8 = vmax.f32 %v815_v3, 0.0 }
 0x1ce   :  { %v817_v16 = vpop.f32.mrf.mxu1  ;;  %1859 = vmatmul.mubr.bf16.gmra.mxu0 %v1048_v2 }
 0x1cf   :  { %v818_v5 = vadd.f32 %v2382_v19, %v817_v16  ;;  %v1000_v7 = vmax.f32 %v826_v58, 0.0 }
 0x1d0   :  { %v1788_v4 = vpop.f32.mrf.mxu1 }
 0x1d1   :  { %v998_v10 = vmax.f32 %v818_v5, 0.0  ;;  %v1050_v15 = vpack.c.bf16 %v1000_v7, %v999_v11  ;;  %v839_v59 = vadd.f32 %v1788_v4, %v2382_v19 }
 0x1d2   :  { %v830_v12 = vpop.f32.mrf.mxu1 }
 0x1d3   :  { %v1049_v13 = vpack.c.bf16 %v998_v10, %v997_v8  ;;  %v831_v36 = vadd.f32 %v2382_v19, %v830_v12  ;;  %v1003_v28 = vmax.f32 %v839_v59, 0.0 }
 0x1d4   :  { %v1789_v17 = vpop.f32.mrf.mxu1 }
 0x1d5   :  { %v842_v18 = vadd.f32 %v1789_v17, %v2382_v19  ;;  %1862 = vmatprep.mubr.bf16.mxu0 %v1049_v13  ;;  %v1001_v27 = vmax.f32 %v831_v36, 0.0 }
 0x1d6   :  { %v833_v20 = vpop.f32.mrf.mxu1  ;;  %1863 = vmatmul.mubr.bf16.gmra.mxu0 %v1050_v15 }
 0x1d7   :  { %v834_v22 = vadd.f32 %v2382_v19, %v833_v20  ;;  %v1004_v23 = vmax.f32 %v842_v18, 0.0 }
 0x1d8   :  { %v1792_v25 = vpop.f32.mrf.mxu1 }
 0x1d9   :  { %v1002_v14 = vmax.f32 %v834_v22, 0.0  ;;  %v1052_v30 = vpack.c.bf16 %v1004_v23, %v1003_v28  ;;  %v855_v32 = vadd.f32 %v1792_v25, %v2382_v19 }
 0x1da   :  { %v846_v24 = vpop.f32.mrf.mxu1 }
 0x1db   :  { %v1051_v53 = vpack.c.bf16 %v1002_v14, %v1001_v27  ;;  %v847_v63 = vadd.f32 %v2382_v19, %v846_v24  ;;  %v1007_v34 = vmax.f32 %v855_v32, 0.0 }
 0x1dc   :  { %v1793_v21 = vpop.f32.mrf.mxu1 }
 0x1dd   :  { %v858_v31 = vadd.f32 %v1793_v21, %v2382_v19  ;;  %1866 = vmatprep.mubr.bf16.mxu0 %v1051_v53  ;;  %v1005_v39 = vmax.f32 %v847_v63, 0.0 }
 0x1de   :  { %v849_v33 = vpop.f32.mrf.mxu1  ;;  %1867 = vmatmul.mubr.bf16.gmra.mxu0 %v1052_v30 }
 0x1df   :  { %v850_v35 = vadd.f32 %v2382_v19, %v849_v33  ;;  %v1008_v37 = vmax.f32 %v858_v31, 0.0 }
 0x1e0   :  { %v1796_v38 = vpop.f32.mrf.mxu1 }
 0x1e1   :  { %v1006_v40 = vmax.f32 %v850_v35, 0.0  ;;  %v1054_v9 = vpack.c.bf16 %v1008_v37, %v1007_v34  ;;  %v871_v44 = vadd.f32 %v1796_v38, %v2382_v19 }
 0x1e2   :  { %v862_v50 = vpop.f32.mrf.mxu1 }
 0x1e3   :  { %v1053_v42 = vpack.c.bf16 %v1006_v40, %v1005_v39  ;;  %v863_v45 = vadd.f32 %v2382_v19, %v862_v50  ;;  %v1011_v41 = vmax.f32 %v871_v44, 0.0 }
 0x1e4   :  { %v1797_v43 = vpop.f32.mrf.mxu1 }
 0x1e5   :  { %v874_v47 = vadd.f32 %v1797_v43, %v2382_v19  ;;  %1870 = vmatprep.mubr.bf16.mxu0 %v1053_v42  ;;  %v1009_v26 = vmax.f32 %v863_v45, 0.0 }
 0x1e6   :  { %v865_v48 = vpop.f32.mrf.mxu1  ;;  %1871 = vmatmul.mubr.bf16.gmra.mxu0 %v1054_v9 }
 0x1e7   :  { %v866_v6 = vadd.f32 %v2382_v19, %v865_v48  ;;  %v1012_v49 = vmax.f32 %v874_v47, 0.0 }
 0x1e8   :  { %v1800_v51 = vpop.f32.mrf.mxu1 }
 0x1e9   :  { %v1010_v29 = vmax.f32 %v866_v6, 0.0  ;;  %v1056_v55 = vpack.c.bf16 %v1012_v49, %v1011_v41  ;;  %v887_v62 = vadd.f32 %v1800_v51, %v2382_v19 }
 0x1ea   :  { %v878_v52 = vpop.f32.mrf.mxu1 }
 0x1eb   :  { %v1055_v54 = vpack.c.bf16 %v1010_v29, %v1009_v26  ;;  %v879_v57 = vadd.f32 %v2382_v19, %v878_v52  ;;  %v1015_v60 = vmax.f32 %v887_v62, 0.0 }
 0x1ec   :  { %v1801_v56 = vpop.f32.mrf.mxu1 }
 0x1ed   :  { %v890_v61 = vadd.f32 %v1801_v56, %v2382_v19  ;;  %1874 = vmatprep.mubr.bf16.mxu0 %v1055_v54  ;;  %v1013_v3 = vmax.f32 %v879_v57, 0.0 }
 0x1ee   :  { %v881_v0 = vpop.f32.mrf.mxu1  ;;  %1875 = vmatmul.mubr.bf16.gmra.mxu0 %v1056_v55 }
 0x1ef   :  { %v882_v1 = vadd.f32 %v2382_v19, %v881_v0  ;;  %v1016_v2 = vmax.f32 %v890_v61, 0.0 }
 0x1f0   :  { %v1804_v46 = vpop.f32.mrf.mxu1 }
 0x1f1   :  { %v1014_v58 = vmax.f32 %v882_v1, 0.0  ;;  %v1058_v7 = vpack.c.bf16 %v1016_v2, %v1015_v60  ;;  %v903_v11 = vadd.f32 %v1804_v46, %v2382_v19 }
 0x1f2   :  { %v894_v16 = vpop.f32.mrf.mxu1 }
 0x1f3   :  { %v1057_v5 = vpack.c.bf16 %v1014_v58, %v1013_v3  ;;  %v895_v8 = vadd.f32 %v2382_v19, %v894_v16  ;;  %v1019_v59 = vmax.f32 %v903_v11, 0.0 }
 0x1f4   :  { %v1805_v4 = vpop.f32.mrf.mxu1 }
 0x1f5   :  { %v906_v10 = vadd.f32 %v1805_v4, %v2382_v19  ;;  %1878 = vmatprep.mubr.bf16.mxu0 %v1057_v5  ;;  %v1017_v36 = vmax.f32 %v895_v8, 0.0 }
 0x1f6   :  { %v897_v12 = vpop.f32.mrf.mxu1  ;;  %1879 = vmatmul.mubr.bf16.gmra.mxu0 %v1058_v7 }
 0x1f7   :  { %v898_v13 = vadd.f32 %v2382_v19, %v897_v12  ;;  %v1020_v15 = vmax.f32 %v906_v10, 0.0 }
 0x1f8   :  { %v1808_v17 = vpop.f32.mrf.mxu1 }
 0x1f9   :  { %v1018_v18 = vmax.f32 %v898_v13, 0.0  ;;  %v1060_v23 = vpack.c.bf16 %v1020_v15, %v1019_v59  ;;  %v919_v28 = vadd.f32 %v1808_v17, %v2382_v19  ;;  %v2451_v13 = vld [vmem:[%s2522_s2 + $0x2] ss:$0 sm:$0xff]  ;;  %s1949_s2 = smov [#allocation2]  }
 0x1fa   :  { %v910_v20 = vpop.f32.mrf.mxu1  ;;  %s1496_s18 = sshll.u32 %s1949_s2, 4  ;;  %s1497_s18 = int_to_ptr.vmem [resolvable:$true] %s1496_s18 }
 0x1fb   :  { %v1059_v22 = vpack.c.bf16 %v1018_v18, %v1017_v36  ;;  %v911_v27 = vadd.f32 %v2382_v19, %v910_v20  ;;  %v1023_v32 = vmax.f32 %v919_v28, 0.0  ;;  %s1927_s19 = scalar_lea.vmem %s1497_s18, 8192  ;;  %p1932_p1 = scmp.lt.s32.totalorder %s1497_s18, %s1497_s18 }
 0x1fc   :  { %v1809_v25 = vpop.f32.mrf.mxu1  ;;  %p1928_p0 = scmp.ne.s32.totalorder %s1497_s18, %s1927_s19  ;;  %p1933_p2 = scmp.lt.s32.totalorder %s1927_s19, %s1927_s19 }
 0x1fd   :  { %v922_v14 = vadd.f32 %v1809_v25, %v2382_v19  ;;  %1882 = vmatprep.mubr.bf16.mxu0 %v1059_v22  ;;  %v1021_v63 = vmax.f32 %v911_v27, 0.0 }
 0x1fe   :  { %v913_v24 = vpop.f32.mrf.mxu1  ;;  %1883 = vmatmul.mubr.bf16.gmra.mxu0 %v1060_v23  ;;  %p1934_p3 = por %p1933_p2, %p1932_p1 }
 0x1ff   :  { %v914_v53 = vadd.f32 %v2382_v19, %v913_v24  ;;  %v1024_v30 = vmax.f32 %v922_v14, 0.0 }
 0x200   :  { %v1812_v21 = vpop.f32.mrf.mxu1  ;;  %p1935_p4 = pnand %p1934_p3, %p1928_p0 }
 0x201   :  { %v1022_v31 = vmax.f32 %v914_v53, 0.0  ;;  %v1062_v37 = vpack.c.bf16 %v1024_v30, %v1023_v32  ;;  %v935_v34 = vadd.f32 %v1812_v21, %v2382_v19 }
 0x202   :  { %v926_v33 = vpop.f32.mrf.mxu1 }
 0x203   :  { %v1061_v35 = vpack.c.bf16 %v1022_v31, %v1021_v63  ;;  %v927_v39 = vadd.f32 %v2382_v19, %v926_v33  ;;  %v1027_v44 = vmax.f32 %v935_v34, 0.0 }
 0x204   :  { %v1813_v38 = vpop.f32.mrf.mxu1 }
 0x205   :  { %v938_v40 = vadd.f32 %v1813_v38, %v2382_v19  ;;  %1886 = vmatprep.mubr.bf16.mxu0 %v1061_v35  ;;  %v1025_v45 = vmax.f32 %v927_v39, 0.0 }
 0x206   :  { %v929_v50 = vpop.f32.mrf.mxu1  ;;  %1887 = vmatmul.mubr.bf16.gmra.mxu0 %v1062_v37 }
 0x207   :  { %v930_v42 = vadd.f32 %v2382_v19, %v929_v50  ;;  %v1028_v9 = vmax.f32 %v938_v40, 0.0 }
 0x208   :  { %v1816_v43 = vpop.f32.mrf.mxu1 }
 0x209   :  { %v1026_v47 = vmax.f32 %v930_v42, 0.0  ;;  %v1064_v49 = vpack.c.bf16 %v1028_v9, %v1027_v44  ;;  %v951_v41 = vadd.f32 %v1816_v43, %v2382_v19 }
 0x20a   :  { %v942_v48 = vpop.f32.mrf.mxu1 }
 0x20b   :  { %v1063_v6 = vpack.c.bf16 %v1026_v47, %v1025_v45  ;;  %v943_v26 = vadd.f32 %v2382_v19, %v942_v48  ;;  %v1031_v62 = vmax.f32 %v951_v41, 0.0 }
 0x20c   :  { %v1817_v51 = vpop.f32.mrf.mxu1 }
 0x20d   :  { %v954_v29 = vadd.f32 %v1817_v51, %v2382_v19  ;;  %1890 = vmatprep.mubr.bf16.mxu0 %v1063_v6  ;;  %v1029_v57 = vmax.f32 %v943_v26, 0.0 }
 0x20e   :  { %v945_v52 = vpop.f32.mrf.mxu1  ;;  %1891 = vmatmul.mubr.bf16.gmra.mxu0 %v1064_v49 }
 0x20f   :  { %v946_v54 = vadd.f32 %v2382_v19, %v945_v52  ;;  %v1032_v55 = vmax.f32 %v954_v29, 0.0 }
 0x210   :  { %v1820_v56 = vpop.f32.mrf.mxu1 }
 0x211   :  { %v1030_v61 = vmax.f32 %v946_v54, 0.0  ;;  %v1066_v2 = vpack.c.bf16 %v1032_v55, %v1031_v62  ;;  %v967_v60 = vadd.f32 %v1820_v56, %v2382_v19 }
 0x212   :  { %v958_v0 = vpop.f32.mrf.mxu1 }
 0x213   :  { %v1065_v1 = vpack.c.bf16 %v1030_v61, %v1029_v57  ;;  %v959_v3 = vadd.f32 %v2382_v19, %v958_v0  ;;  %v1035_v10 = vmax.f32 %v967_v60, 0.0 }
 0x214   :  { %v1821_v46 = vpop.f32.mrf.mxu1 }
 0x215   :  { %v970_v58 = vadd.f32 %v1821_v46, %v2382_v19  ;;  %1894 = vmatprep.mubr.bf16.mxu0 %v1065_v1  ;;  %v1033_v4 = vmax.f32 %v959_v3, 0.0 }
 0x216   :  { %v961_v16 = vpop.f32.mrf.mxu1  ;;  %1895 = vmatmul.mubr.bf16.gmra.mxu0 %v1066_v2 }
 0x217   :  { %v962_v5 = vadd.f32 %v2382_v19, %v961_v16  ;;  %v1036_v7 = vmax.f32 %v970_v58, 0.0 }
 0x219   :  { %v1034_v8 = vmax.f32 %v962_v5, 0.0  ;;  %v1068_v12 = vpack.c.bf16 %v1036_v7, %v1035_v10 }
 0x21b   :  { %v1067_v11 = vpack.c.bf16 %v1034_v8, %v1033_v4 }
 0x21d   :  { %1898 = vmatprep.mubr.bf16.mxu0 %v1067_v11 }
 0x21e   :  { %1899 = vmatmul.mubr.bf16.gmra.mxu0 %v1068_v12 }
 0x266   :  { %v1840_v15 = vpop.f32.mrf.mxu0 }
 0x267   :  { %v1181_v17 = vadd.f32 %v1840_v15, %v2451_v13 }
 0x268   :  { %v1172_v36 = vpop.f32.mrf.mxu0 }
 0x269   :  { %1429 = vst [vmem:[#allocation2 + $0x10] sm:$0xff] %v1181_v17  ;;  %v1173_v19 = vadd.f32 %v2451_v13, %v1172_v36 }
 0x26a   :  { %v1841_v18 = vpop.f32.mrf.mxu0 }
 0x26b   :  { %1427 = vst [vmem:[#allocation2] sm:$0xff] %v1173_v19  ;;  %v1184_v59 = vadd.f32 %v1841_v18, %v2451_v13 }
 0x26c   :  { %v1175_v20 = vpop.f32.mrf.mxu0 }
 0x26d   :  { %1430 = vst [vmem:[#allocation2 + $0x18] sm:$0xff] %v1184_v59  ;;  %v1176_v22 = vadd.f32 %v2451_v13, %v1175_v20 }
 0x26e   :  { %v1844_v23 = vpop.f32.mrf.mxu0 }
 0x26f   :  { %1428 = vst [vmem:[#allocation2 + $0x8] sm:$0xff] %v1176_v22  ;;  %v1197_v25 = vadd.f32 %v1844_v23, %v2451_v13 }
 0x270   :  { %v1188_v27 = vpop.f32.mrf.mxu0 }
 0x271   :  { %1433 = vst [vmem:[#allocation2 + $0x30] sm:$0xff] %v1197_v25  ;;  %v1189_v14 = vadd.f32 %v2451_v13, %v1188_v27 }
 0x272   :  { %v1845_v28 = vpop.f32.mrf.mxu0 }
 0x273   :  { %1431 = vst [vmem:[#allocation2 + $0x20] sm:$0xff] %v1189_v14  ;;  %v1200_v24 = vadd.f32 %v1845_v28, %v2451_v13 }
 0x274   :  { %v1191_v53 = vpop.f32.mrf.mxu0 }
 0x275   :  { %1434 = vst [vmem:[#allocation2 + $0x38] sm:$0xff] %v1200_v24  ;;  %v1192_v30 = vadd.f32 %v2451_v13, %v1191_v53 }
 0x276   :  { %v1848_v21 = vpop.f32.mrf.mxu0 }
 0x277   :  { %1432 = vst [vmem:[#allocation2 + $0x28] sm:$0xff] %v1192_v30  ;;  %v1213_v63 = vadd.f32 %v1848_v21, %v2451_v13 }
 0x278   :  { %v1204_v31 = vpop.f32.mrf.mxu0 }
 0x279   :  { %1437 = vst [vmem:[#allocation2 + $0x50] sm:$0xff] %v1213_v63  ;;  %v1205_v32 = vadd.f32 %v2451_v13, %v1204_v31 }
 0x27a   :  { %v1849_v33 = vpop.f32.mrf.mxu0 }
 0x27b   :  { %1435 = vst [vmem:[#allocation2 + $0x40] sm:$0xff] %v1205_v32  ;;  %v1216_v35 = vadd.f32 %v1849_v33, %v2451_v13 }
 0x27c   :  { %v1207_v37 = vpop.f32.mrf.mxu0 }
 0x27d   :  { %1438 = vst [vmem:[#allocation2 + $0x58] sm:$0xff] %v1216_v35  ;;  %v1208_v38 = vadd.f32 %v2451_v13, %v1207_v37 }
 0x27e   :  { %v1852_v39 = vpop.f32.mrf.mxu0 }
 0x27f   :  { %1436 = vst [vmem:[#allocation2 + $0x48] sm:$0xff] %v1208_v38  ;;  %v1229_v40 = vadd.f32 %v1852_v39, %v2451_v13 }
 0x280   :  { %v1220_v34 = vpop.f32.mrf.mxu0 }
 0x281   :  { %1441 = vst [vmem:[#allocation2 + $0x70] sm:$0xff] %v1229_v40  ;;  %v1221_v50 = vadd.f32 %v2451_v13, %v1220_v34 }
 0x282   :  { %v1853_v42 = vpop.f32.mrf.mxu0 }
 0x283   :  { %1439 = vst [vmem:[#allocation2 + $0x60] sm:$0xff] %v1221_v50  ;;  %v1232_v9 = vadd.f32 %v1853_v42, %v2451_v13 }
 0x284   :  { %v1223_v43 = vpop.f32.mrf.mxu0 }
 0x285   :  { %1442 = vst [vmem:[#allocation2 + $0x78] sm:$0xff] %v1232_v9  ;;  %v1224_v45 = vadd.f32 %v2451_v13, %v1223_v43 }
 0x286   :  { %v1856_v47 = vpop.f32.mrf.mxu0 }
 0x287   :  { %1440 = vst [vmem:[#allocation2 + $0x68] sm:$0xff] %v1224_v45  ;;  %v1245_v44 = vadd.f32 %v1856_v47, %v2451_v13 }
 0x288   :  { %v1236_v48 = vpop.f32.mrf.mxu0 }
 0x289   :  { %1445 = vst [vmem:[#allocation2 + $0x90] sm:$0xff] %v1245_v44  ;;  %v1237_v6 = vadd.f32 %v2451_v13, %v1236_v48 }
 0x28a   :  { %v1857_v49 = vpop.f32.mrf.mxu0 }
 0x28b   :  { %1443 = vst [vmem:[#allocation2 + $0x80] sm:$0xff] %v1237_v6  ;;  %v1248_v51 = vadd.f32 %v1857_v49, %v2451_v13 }
 0x28c   :  { %v1239_v26 = vpop.f32.mrf.mxu0 }
 0x28d   :  { %1446 = vst [vmem:[#allocation2 + $0x98] sm:$0xff] %v1248_v51  ;;  %v1240_v29 = vadd.f32 %v2451_v13, %v1239_v26 }
 0x28e   :  { %v1860_v41 = vpop.f32.mrf.mxu0 }
 0x28f   :  { %1444 = vst [vmem:[#allocation2 + $0x88] sm:$0xff] %v1240_v29  ;;  %v1261_v52 = vadd.f32 %v1860_v41, %v2451_v13 }
 0x290   :  { %v1252_v54 = vpop.f32.mrf.mxu0 }
 0x291   :  { %1449 = vst [vmem:[#allocation2 + $0xb0] sm:$0xff] %v1261_v52  ;;  %v1253_v55 = vadd.f32 %v2451_v13, %v1252_v54 }
 0x292   :  { %v1861_v56 = vpop.f32.mrf.mxu0 }
 0x293   :  { %1447 = vst [vmem:[#allocation2 + $0xa0] sm:$0xff] %v1253_v55  ;;  %v1264_v57 = vadd.f32 %v1861_v56, %v2451_v13 }
 0x294   :  { %v1255_v61 = vpop.f32.mrf.mxu0 }
 0x295   :  { %1450 = vst [vmem:[#allocation2 + $0xb8] sm:$0xff] %v1264_v57  ;;  %v1256_v62 = vadd.f32 %v2451_v13, %v1255_v61 }
 0x296   :  { %v1864_v0 = vpop.f32.mrf.mxu0 }
 0x297   :  { %1448 = vst [vmem:[#allocation2 + $0xa8] sm:$0xff] %v1256_v62  ;;  %v1277_v1 = vadd.f32 %v1864_v0, %v2451_v13 }
 0x298   :  { %v1268_v2 = vpop.f32.mrf.mxu0 }
 0x299   :  { %1453 = vst [vmem:[#allocation2 + $0xd0] sm:$0xff] %v1277_v1  ;;  %v1269_v46 = vadd.f32 %v2451_v13, %v1268_v2 }
 0x29a   :  { %v1865_v3 = vpop.f32.mrf.mxu0 }
 0x29b   :  { %1451 = vst [vmem:[#allocation2 + $0xc0] sm:$0xff] %v1269_v46  ;;  %v1280_v58 = vadd.f32 %v1865_v3, %v2451_v13 }
 0x29c   :  { %v1271_v60 = vpop.f32.mrf.mxu0 }
 0x29d   :  { %1454 = vst [vmem:[#allocation2 + $0xd8] sm:$0xff] %v1280_v58  ;;  %v1272_v16 = vadd.f32 %v2451_v13, %v1271_v60 }
 0x29e   :  { %v1868_v5 = vpop.f32.mrf.mxu0 }
 0x29f   :  { %1452 = vst [vmem:[#allocation2 + $0xc8] sm:$0xff] %v1272_v16  ;;  %v1293_v7 = vadd.f32 %v1868_v5, %v2451_v13 }
 0x2a0   :  { %v1284_v4 = vpop.f32.mrf.mxu0 }
 0x2a1   :  { %1457 = vst [vmem:[#allocation2 + $0xf0] sm:$0xff] %v1293_v7  ;;  %v1285_v8 = vadd.f32 %v2451_v13, %v1284_v4 }
 0x2a2   :  { %v1869_v10 = vpop.f32.mrf.mxu0 }
 0x2a3   :  { %1455 = vst [vmem:[#allocation2 + $0xe0] sm:$0xff] %v1285_v8  ;;  %v1296_v11 = vadd.f32 %v1869_v10, %v2451_v13 }
 0x2a4   :  { %v1287_v12 = vpop.f32.mrf.mxu0 }
 0x2a5   :  { %1458 = vst [vmem:[#allocation2 + $0xf8] sm:$0xff] %v1296_v11  ;;  %v1288_v15 = vadd.f32 %v2451_v13, %v1287_v12 }
 0x2a6   :  { %v1872_v17 = vpop.f32.mrf.mxu0 }
 0x2a7   :  { %1456 = vst [vmem:[#allocation2 + $0xe8] sm:$0xff] %v1288_v15  ;;  %v1309_v36 = vadd.f32 %v1872_v17, %v2451_v13 }
 0x2a8   :  { %v1300_v19 = vpop.f32.mrf.mxu0 }
 0x2a9   :  { %1461 = vst [vmem:[#allocation2 + $0x110] sm:$0xff] %v1309_v36  ;;  %v1301_v18 = vadd.f32 %v2451_v13, %v1300_v19 }
 0x2aa   :  { %v1873_v59 = vpop.f32.mrf.mxu0 }
 0x2ab   :  { %1459 = vst [vmem:[#allocation2 + $0x100] sm:$0xff] %v1301_v18  ;;  %v1312_v20 = vadd.f32 %v1873_v59, %v2451_v13 }
 0x2ac   :  { %v1303_v22 = vpop.f32.mrf.mxu0 }
 0x2ad   :  { %1462 = vst [vmem:[#allocation2 + $0x118] sm:$0xff] %v1312_v20  ;;  %v1304_v23 = vadd.f32 %v2451_v13, %v1303_v22 }
 0x2ae   :  { %v1876_v25 = vpop.f32.mrf.mxu0 }
 0x2af   :  { %1460 = vst [vmem:[#allocation2 + $0x108] sm:$0xff] %v1304_v23  ;;  %v1325_v27 = vadd.f32 %v1876_v25, %v2451_v13 }
 0x2b0   :  { %v1316_v14 = vpop.f32.mrf.mxu0 }
 0x2b1   :  { %1465 = vst [vmem:[#allocation2 + $0x130] sm:$0xff] %v1325_v27  ;;  %v1317_v28 = vadd.f32 %v2451_v13, %v1316_v14 }
 0x2b2   :  { %v1877_v24 = vpop.f32.mrf.mxu0 }
 0x2b3   :  { %1463 = vst [vmem:[#allocation2 + $0x120] sm:$0xff] %v1317_v28  ;;  %v1328_v53 = vadd.f32 %v1877_v24, %v2451_v13 }
 0x2b4   :  { %v1319_v30 = vpop.f32.mrf.mxu0 }
 0x2b5   :  { %1466 = vst [vmem:[#allocation2 + $0x138] sm:$0xff] %v1328_v53  ;;  %v1320_v21 = vadd.f32 %v2451_v13, %v1319_v30 }
 0x2b6   :  { %v1880_v63 = vpop.f32.mrf.mxu0 }
 0x2b7   :  { %1464 = vst [vmem:[#allocation2 + $0x128] sm:$0xff] %v1320_v21  ;;  %v1341_v31 = vadd.f32 %v1880_v63, %v2451_v13 }
 0x2b8   :  { %v1332_v32 = vpop.f32.mrf.mxu0 }
 0x2b9   :  { %1469 = vst [vmem:[#allocation2 + $0x150] sm:$0xff] %v1341_v31  ;;  %v1333_v33 = vadd.f32 %v2451_v13, %v1332_v32 }
 0x2ba   :  { %v1881_v35 = vpop.f32.mrf.mxu0 }
 0x2bb   :  { %1467 = vst [vmem:[#allocation2 + $0x140] sm:$0xff] %v1333_v33  ;;  %v1344_v37 = vadd.f32 %v1881_v35, %v2451_v13 }
 0x2bc   :  { %v1335_v38 = vpop.f32.mrf.mxu0 }
 0x2bd   :  { %1470 = vst [vmem:[#allocation2 + $0x158] sm:$0xff] %v1344_v37  ;;  %v1336_v39 = vadd.f32 %v2451_v13, %v1335_v38 }
 0x2be   :  { %v1884_v40 = vpop.f32.mrf.mxu0 }
 0x2bf   :  { %1468 = vst [vmem:[#allocation2 + $0x148] sm:$0xff] %v1336_v39  ;;  %v1357_v34 = vadd.f32 %v1884_v40, %v2451_v13 }
 0x2c0   :  { %v1348_v50 = vpop.f32.mrf.mxu0 }
 0x2c1   :  { %1473 = vst [vmem:[#allocation2 + $0x170] sm:$0xff] %v1357_v34  ;;  %v1349_v42 = vadd.f32 %v2451_v13, %v1348_v50 }
 0x2c2   :  { %v1885_v9 = vpop.f32.mrf.mxu0 }
 0x2c3   :  { %1471 = vst [vmem:[#allocation2 + $0x160] sm:$0xff] %v1349_v42  ;;  %v1360_v43 = vadd.f32 %v1885_v9, %v2451_v13 }
 0x2c4   :  { %v1351_v45 = vpop.f32.mrf.mxu0 }
 0x2c5   :  { %1474 = vst [vmem:[#allocation2 + $0x178] sm:$0xff] %v1360_v43  ;;  %v1352_v47 = vadd.f32 %v2451_v13, %v1351_v45 }
 0x2c6   :  { %v1888_v44 = vpop.f32.mrf.mxu0 }
 0x2c7   :  { %1472 = vst [vmem:[#allocation2 + $0x168] sm:$0xff] %v1352_v47  ;;  %v1373_v48 = vadd.f32 %v1888_v44, %v2451_v13 }
 0x2c8   :  { %v1364_v6 = vpop.f32.mrf.mxu0 }
 0x2c9   :  { %1477 = vst [vmem:[#allocation2 + $0x190] sm:$0xff] %v1373_v48  ;;  %v1365_v49 = vadd.f32 %v2451_v13, %v1364_v6 }
 0x2ca   :  { %v1889_v51 = vpop.f32.mrf.mxu0 }
 0x2cb   :  { %1475 = vst [vmem:[#allocation2 + $0x180] sm:$0xff] %v1365_v49  ;;  %v1376_v26 = vadd.f32 %v1889_v51, %v2451_v13 }
 0x2cc   :  { %v1367_v29 = vpop.f32.mrf.mxu0 }
 0x2cd   :  { %1478 = vst [vmem:[#allocation2 + $0x198] sm:$0xff] %v1376_v26  ;;  %v1368_v41 = vadd.f32 %v2451_v13, %v1367_v29 }
 0x2ce   :  { %v1892_v52 = vpop.f32.mrf.mxu0 }
 0x2cf   :  { %1476 = vst [vmem:[#allocation2 + $0x188] sm:$0xff] %v1368_v41  ;;  %v1389_v54 = vadd.f32 %v1892_v52, %v2451_v13 }
 0x2d0   :  { %v1380_v55 = vpop.f32.mrf.mxu0 }
 0x2d1   :  { %1481 = vst [vmem:[#allocation2 + $0x1b0] sm:$0xff] %v1389_v54  ;;  %v1381_v56 = vadd.f32 %v2451_v13, %v1380_v55 }
 0x2d2   :  { %v1893_v57 = vpop.f32.mrf.mxu0 }
 0x2d3   :  { %1479 = vst [vmem:[#allocation2 + $0x1a0] sm:$0xff] %v1381_v56  ;;  %v1392_v61 = vadd.f32 %v1893_v57, %v2451_v13 }
 0x2d4   :  { %v1383_v62 = vpop.f32.mrf.mxu0 }
 0x2d5   :  { %1482 = vst [vmem:[#allocation2 + $0x1b8] sm:$0xff] %v1392_v61  ;;  %v1384_v0 = vadd.f32 %v2451_v13, %v1383_v62 }
 0x2d6   :  { %v1896_v1 = vpop.f32.mrf.mxu0 }
 0x2d7   :  { %1480 = vst [vmem:[#allocation2 + $0x1a8] sm:$0xff] %v1384_v0  ;;  %v1405_v2 = vadd.f32 %v1896_v1, %v2451_v13 }
 0x2d8   :  { %v1396_v46 = vpop.f32.mrf.mxu0 }
 0x2d9   :  { %1485 = vst [vmem:[#allocation2 + $0x1d0] sm:$0xff] %v1405_v2  ;;  %v1397_v3 = vadd.f32 %v2451_v13, %v1396_v46 }
 0x2da   :  { %v1897_v58 = vpop.f32.mrf.mxu0 }
 0x2db   :  { %1483 = vst [vmem:[#allocation2 + $0x1c0] sm:$0xff] %v1397_v3  ;;  %v1408_v60 = vadd.f32 %v1897_v58, %v2451_v13 }
 0x2dc   :  { %v1399_v16 = vpop.f32.mrf.mxu0 }
 0x2dd   :  { %1486 = vst [vmem:[#allocation2 + $0x1d8] sm:$0xff] %v1408_v60  ;;  %v1400_v5 = vadd.f32 %v2451_v13, %v1399_v16 }
 0x2de   :  { %v1900_v7 = vpop.f32.mrf.mxu0 }
 0x2df   :  { %1484 = vst [vmem:[#allocation2 + $0x1c8] sm:$0xff] %v1400_v5  ;;  %v1421_v4 = vadd.f32 %v1900_v7, %v2451_v13 }
 0x2e0   :  { %v1412_v8 = vpop.f32.mrf.mxu0 }
 0x2e1   :  { %1489 = vst [vmem:[#allocation2 + $0x1f0] sm:$0xff] %v1421_v4  ;;  %v1413_v10 = vadd.f32 %v2451_v13, %v1412_v8 }
 0x2e2   :  { %v1901_v11 = vpop.f32.mrf.mxu0 }
 0x2e3   :  { %1487 = vst [vmem:[#allocation2 + $0x1e0] sm:$0xff] %v1413_v10  ;;  %v1424_v12 = vadd.f32 %v1901_v11, %v2451_v13 }
 0x2e4   :  { %v1415_v15 = vpop.f32.mrf.mxu0 }
 0x2e5   :  { %1490 = vst [vmem:[#allocation2 + $0x1f8] sm:$0xff] %v1424_v12  ;;  %v1416_v17 = vadd.f32 %v2451_v13, %v1415_v15 }
 0x2e7   :  { %1488 = vst [vmem:[#allocation2 + $0x1e8] sm:$0xff] %v1416_v17 }
 0x2e8   :  { %1938 = shalt.err (!%p1935_p4)
}
 0x2e9   :  { %s1950_s20 = smov 128   ;;  %s1951_s21 = smov 8  }
 0x2ea   :  { %1502 = dma.vmem_to_hbm [thread:$0]  %s1497_s18, 8192, %s2523_s3, [#allocation3], %s1950_s20, %s1950_s20, %s1951_s21  }
 0x2eb   :  { %1947 = dma.done.wait [#allocation3], 8192  }
 0x2ec   :  { %1948 = vsyncadd [#allocation3], 4294959104 }
 0x2ed   :  { %1506 = vsyncpa [#allocation3], 1 }

</bundles_post_ra>
